<compile_context>
chip_gen: v7x
topology: tpu7x:2x2x1
jax: 0.10.0
libtpu: 0.0.40
codegen_flags: <defaults>
</compile_context>

<pallas_src>
import functools

import jax
import jax.numpy as jnp
from jax.experimental import pallas as pl
from jax.experimental.pallas import tpu as pltpu


def _make_basic_block_kernel(H, W, C, P, nb):
    """Kernel factory. C == P (stride=1 / no downsample)."""
    L = H * W
    # Lane padding covering the largest tap shift (W+1), rounded to 128 so the
    # interior store and border zero-fills are lane-aligned.
    PADL = ((W + 1 + 127) // 128) * 128
    TOT = PADL + L + PADL
    # Per-tap row-block size in the im2col buffer, rounded to the sublane (8)
    # so every row-block write is aligned; padding rows carry zero weights.
    CP = ((C + 7) // 8) * 8
    TAPS = [(dh, dw) for dh in range(3) for dw in range(3)]

    def kernel(x_ref, w1_ref, b1_ref, w2_ref, b2_ref, out_ref,
               xp_ref, col_ref):
        # x_ref  : (nb, C, L)      f32   inputs, spatial flattened on lanes
        # w*_ref : (P, 9*CP)       bf16  BN-scale-folded conv weights
        # b*_ref : (P, 1)          f32   fused BN biases
        # out_ref: (nb, P, L)      f32   (maps directly onto NCHW)
        # xp_ref : (C, TOT)        f32   lane-padded activation row buffer
        # col_ref: (9*CP, nb*L)    bf16  im2col (stacked-tap) matmul RHS

        # Zero only what needs zeroing, every step (stays correct when the
        # "parallel" batch axis is sharded across TensorCores).
        xp_ref[:, :PADL] = jnp.zeros((C, PADL), xp_ref.dtype)
        xp_ref[:, PADL + L:PADL + L + PADL] = jnp.zeros((C, PADL),
                                                        xp_ref.dtype)
        if CP > C:
            # Padding rows of the im2col buffer must be zero (their weight
            # columns are zero, but 0 * garbage could be NaN).
            col_ref[...] = jnp.zeros(col_ref.shape, col_ref.dtype)

        # Column-boundary masks (row boundaries are handled by the zero pad).
        # Computed once per step, reused by both convs.
        colidx = jax.lax.broadcasted_iota(jnp.int32, (1, L), 1) % W
        not_first_col = colidx > 0          # needed for dw == 0 taps
        not_last_col = colidx < (W - 1)     # needed for dw == 2 taps

        def build_cols(get_image):
            """Fill col_ref with the 9 masked, lane-shifted taps of nb images."""
            for i in range(nb):
                xp_ref[:, PADL:PADL + L] = get_image(i)       # (C, L) f32
                for t, (dh, dw) in enumerate(TAPS):
                    delta = (dh - 1) * W + (dw - 1)
                    start = PADL + delta
                    tap = xp_ref[:, start:start + L]          # (C, L) f32
                    if dw == 0:
                        tap = jnp.where(not_first_col, tap, 0.0)
                    elif dw == 2:
                        tap = jnp.where(not_last_col, tap, 0.0)
                    col_ref[t * CP:t * CP + C, i * L:(i + 1) * L] = (
                        tap.astype(col_ref.dtype))

        # ---- conv1 (single matmul) -> +bias -> relu ----
        build_cols(lambda i: x_ref[i])
        a1 = jnp.dot(w1_ref[...], col_ref[...],
                     preferred_element_type=jnp.float32) + b1_ref[...]
        a1 = jnp.maximum(a1, 0.0)                              # (P, nb*L) f32

        # ---- conv2 (single matmul) -> +bias ----
        build_cols(lambda i: a1[:, i * L:(i + 1) * L])
        a2 = jnp.dot(w2_ref[...], col_ref[...],
                     preferred_element_type=jnp.float32) + b2_ref[...]

        # ---- residual add (identity path, re-read f32 from x_ref) + relu ----
        for i in range(nb):
            out_ref[i] = jnp.maximum(
                a2[:, i * L:(i + 1) * L] + x_ref[i], 0.0).astype(out_ref.dtype)

    return kernel, PADL, TOT, CP


def _default_batch_chunks(n_batch):
    """2 grid steps only on chips with 2 TensorCores (v4/v5p megacore, v7x)."""
    try:
        kind = jax.devices()[0].device_kind.lower()
    except Exception:
        kind = ""
    two_tc = ("v7" in kind or "v4" in kind
              or ("v5" in kind and "lite" not in kind and "v5e" not in kind))
    if two_tc and n_batch >= 2 and n_batch % 2 == 0:
        return 2
    return 1


@functools.partial(jax.jit,
                   static_argnames=("eps", "mxu_dtype", "batch_chunks"))
def basic_block_forward(x_nchw, w1, bn1, w2, bn2, eps=1e-5,
                        mxu_dtype=jnp.bfloat16, batch_chunks=1):
    """Fused BasicBlock forward (stride=1, downsample=None).

    x_nchw : (N, C, H, W) f32.   w1/w2: (P, C, 3, 3) PyTorch OIHW layout.
    bn1/bn2: dicts with gamma/beta/running_mean/running_var of shape (P,).
    """
    N, Cin, H, W = x_nchw.shape
    P = w1.shape[0]
    assert Cin == P, "stride=1 / downsample=None BasicBlock needs inplanes==planes"
    assert w1.shape == (P, Cin, 3, 3) and w2.shape == (P, P, 3, 3)
    L = H * W

    n_chunks = batch_chunks
    if n_chunks < 1 or N % n_chunks != 0:
        n_chunks = 1
    nb = N // n_chunks

    kernel, PADL, TOT, CP = _make_basic_block_kernel(H, W, Cin, P, nb)

    # NCHW -> (N, C, H*W): a free reshape (no transpose / pad HBM passes).
    x_flat = x_nchw.reshape(N, Cin, L).astype(jnp.float32)

    def fuse_bn(bn):
        scale = bn["gamma"].astype(jnp.float32) / jnp.sqrt(
            bn["running_var"].astype(jnp.float32) + eps)
        bias = bn["beta"].astype(jnp.float32) - \
            bn["running_mean"].astype(jnp.float32) * scale
        return scale, bias.reshape(P, 1)

    s1, b1 = fuse_bn(bn1)
    s2, b2 = fuse_bn(bn2)

    def fold_weights(w, scale):
        # OIHW -> (P, tap, Cin) with tap = kh*3 + kw, BN scale folded in f32,
        # channel dim padded to CP, then one bf16 cast.
        Pn, Ci = w.shape[0], w.shape[1]
        wf = w.astype(jnp.float32) * scale[:, None, None, None]
        wf = jnp.transpose(wf, (0, 2, 3, 1)).reshape(Pn, 9, Ci)
        if CP > Ci:
            wf = jnp.pad(wf, ((0, 0), (0, 0), (0, CP - Ci)))
        return wf.reshape(Pn, 9 * CP).astype(mxu_dtype)

    w1_m = fold_weights(w1, s1)
    w2_m = fold_weights(w2, s2)

    out_flat = pl.pallas_call(
        kernel,
        out_shape=jax.ShapeDtypeStruct((N, P, L), jnp.float32),
        grid_spec=pltpu.PrefetchScalarGridSpec(
            num_scalar_prefetch=0,
            grid=(n_chunks,),
            in_specs=[
                pl.BlockSpec((nb, Cin, L), lambda g: (g, 0, 0)),
                pl.BlockSpec((P, 9 * CP), lambda g: (0, 0)),
                pl.BlockSpec((P, 1), lambda g: (0, 0)),
                pl.BlockSpec((P, 9 * CP), lambda g: (0, 0)),
                pl.BlockSpec((P, 1), lambda g: (0, 0)),
            ],
            out_specs=pl.BlockSpec((nb, P, L), lambda g: (g, 0, 0)),
            scratch_shapes=[
                pltpu.VMEM((Cin, TOT), jnp.float32),       # padded row buffer
                pltpu.VMEM((9 * CP, nb * L), mxu_dtype),   # im2col RHS
            ],
        ),
        compiler_params=pltpu.CompilerParams(
            # batch chunks are independent -> 2-TC chips split them
            dimension_semantics=("parallel",)),
    )(x_flat, w1_m, b1, w2_m, b2)

    return out_flat.reshape(N, P, H, W)


def basic_block_ref(x, w1, bn1, w2, bn2, eps=1e-5):
    """Pure-JAX f32 reference matching the PyTorch module in eval mode."""
    def conv(v, w):
        return jax.lax.conv_general_dilated(
            v, w, window_strides=(1, 1), padding=((1, 1), (1, 1)),
            dimension_numbers=("NCHW", "OIHW", "NCHW"),
            precision=jax.lax.Precision.HIGHEST)

    def bn(v, p):
        scale = p["gamma"] / jnp.sqrt(p["running_var"] + eps)
        bias = p["beta"] - p["running_mean"] * scale
        return v * scale[None, :, None, None] + bias[None, :, None, None]

    out = jax.nn.relu(bn(conv(x, w1), bn1))
    out = bn(conv(out, w2), bn2)
    return jax.nn.relu(out + x)


if __name__ == "__main__":
    key = jax.random.PRNGKey(0)
    N, C, H, W = 2, 4, 16, 16          # inplanes = planes = 4, stride = 1
    k_x, k_w1, k_w2 = jax.random.split(key, 3)

    x = jax.random.normal(k_x, (N, C, H, W), dtype=jnp.float32)
    # Deterministic synthetic conv weights (PyTorch layout: out, in, kh, kw).
    w1 = 0.1 * jax.random.normal(k_w1, (C, C, 3, 3), dtype=jnp.float32)
    w2 = 0.1 * jax.random.normal(k_w2, (C, C, 3, 3), dtype=jnp.float32)

    # BatchNorm2d defaults (inference mode).
    bn_default = dict(
        gamma=jnp.ones((C,), jnp.float32),
        beta=jnp.zeros((C,), jnp.float32),
        running_mean=jnp.zeros((C,), jnp.float32),
        running_var=jnp.ones((C,), jnp.float32),
    )

    chunks = _default_batch_chunks(N)
    y = basic_block_forward(x, w1, bn_default, w2, bn_default,
                            batch_chunks=chunks)
    y = jax.block_until_ready(y)

    assert y.shape == (N, C, H, W)
    assert bool(jnp.all(jnp.isfinite(y)))
    assert bool(jnp.all(y >= 0.0))     # final ReLU

    # Numerical check vs a pure-JAX f32 reference (kernel uses bf16 MXU
    # operands with f32 accumulation -> small tolerance).
    y_ref = basic_block_ref(x, w1, bn_default, w2, bn_default)
    max_err = float(jnp.max(jnp.abs(y - y_ref)))
    assert max_err < 5e-2, f"max abs err vs reference: {max_err}"

    print("KERNEL_OK")
</pallas_src>

<mosaic_0001>
module attributes {stable_mosaic.version = 11 : i64} {
  func.func @kernel(%arg0: i32, %arg1: memref<2x4x256xf32, #tpu.memory_space<vmem>>, %arg2: memref<4x72xbf16, #tpu.memory_space<vmem>>, %arg3: memref<4x1xf32, #tpu.memory_space<vmem>>, %arg4: memref<4x72xbf16, #tpu.memory_space<vmem>>, %arg5: memref<4x1xf32, #tpu.memory_space<vmem>>, %arg6: memref<2x4x256xf32, #tpu.memory_space<vmem>>, %arg7: memref<4x512xf32, #tpu.memory_space<vmem>>, %arg8: memref<72x512xbf16, #tpu.memory_space<vmem>>) attributes {dimension_semantics = [#tpu.dimension_semantics<parallel>], iteration_bounds = array<i64: 1>, scalar_prefetch = 0 : i64, scratch_operands = 2 : i64, tpu.core_type = #tpu.core_type<tc>, window_params = [{transform_indices = @transform_0, window_bounds = array<i64: 2, 4, 256>}, {pipeline_mode = #tpu.pipeline_mode<synchronous>, transform_indices = @transform_1, window_bounds = array<i64: 4, 72>}, {pipeline_mode = #tpu.pipeline_mode<synchronous>, transform_indices = @transform_2, window_bounds = array<i64: 4, 1>}, {pipeline_mode = #tpu.pipeline_mode<synchronous>, transform_indices = @transform_3, window_bounds = array<i64: 4, 72>}, {pipeline_mode = #tpu.pipeline_mode<synchronous>, transform_indices = @transform_4, window_bounds = array<i64: 4, 1>}, {transform_indices = @transform_5, window_bounds = array<i64: 2, 4, 256>}]} {
    %cst = arith.constant 0.000000e+00 : f32
    %0 = vector.broadcast %cst : f32 to vector<4x128xf32>
    %c0 = arith.constant 0 : index
    %c0_0 = arith.constant 0 : index
    %1 = vector.load %arg7[%c0, %c0_0] : memref<4x512xf32, #tpu.memory_space<vmem>>, vector<4x128xf32>
    tpu.vector_store %arg7[%c0, %c0_0], %0 {strides = array<i32>} : memref<4x512xf32, #tpu.memory_space<vmem>>, vector<4x128xf32>,
    %cst_1 = arith.constant 0.000000e+00 : f32
    %2 = vector.broadcast %cst_1 : f32 to vector<4x128xf32>
    %c0_2 = arith.constant 0 : index
    %c384 = arith.constant 384 : index
    %3 = vector.load %arg7[%c0_2, %c384] : memref<4x512xf32, #tpu.memory_space<vmem>>, vector<4x128xf32>
    tpu.vector_store %arg7[%c0_2, %c384], %2 {strides = array<i32>} : memref<4x512xf32, #tpu.memory_space<vmem>>, vector<4x128xf32>,
    %cst_3 = arith.constant 0.000000e+00 : bf16
    %4 = vector.broadcast %cst_3 : bf16 to vector<72x512xbf16>
    %c0_4 = arith.constant 0 : index
    %c0_5 = arith.constant 0 : index
    %5 = vector.load %arg8[%c0_4, %c0_5] : memref<72x512xbf16, #tpu.memory_space<vmem>>, vector<72x512xbf16>
    tpu.vector_store %arg8[%c0_4, %c0_5], %4 {strides = array<i32>} : memref<72x512xbf16, #tpu.memory_space<vmem>>, vector<72x512xbf16>,
    %6 = tpu.iota {dimensions = array<i32: 1>} : vector<1x256xi32>
    %c16_i32 = arith.constant 16 : i32
    %c0_i32 = arith.constant 0 : i32
    %7 = arith.cmpi eq, %c16_i32, %c0_i32 : i32
    %c1_i32 = arith.constant 1 : i32
    %8 = arith.select %7, %c1_i32, %c16_i32 : i32
    %9 = vector.broadcast %8 : i32 to vector<1x256xi32>
    %10 = arith.remsi %6, %9 : vector<1x256xi32>
    %c0_i32_6 = arith.constant 0 : i32
    %11 = vector.broadcast %c0_i32_6 : i32 to vector<1x256xi32>
    %12 = arith.cmpi ne, %10, %11 : vector<1x256xi32>
    %c0_i32_7 = arith.constant 0 : i32
    %13 = vector.broadcast %c0_i32_7 : i32 to vector<1x256xi32>
    %14 = arith.cmpi slt, %10, %13 : vector<1x256xi32>
    %c0_i32_8 = arith.constant 0 : i32
    %15 = arith.cmpi slt, %8, %c0_i32_8 : i32
    %16 = vector.broadcast %15 : i1 to vector<1x256xi1>
    %17 = vector.broadcast %16 : vector<1x256xi1> to vector<1x256xi1>
    %18 = arith.xori %14, %17 : vector<1x256xi1>
    %19 = arith.andi %18, %12 : vector<1x256xi1>
    %20 = vector.broadcast %8 : i32 to vector<1x256xi32>
    %21 = arith.addi %10, %20 : vector<1x256xi32>
    %22 = arith.select %19, %21, %10 : vector<1x256xi1>, vector<1x256xi32>
    %c0_i32_9 = arith.constant 0 : i32
    %23 = vector.broadcast %c0_i32_9 : i32 to vector<1x256xi32>
    %24 = arith.cmpi sgt, %22, %23 : vector<1x256xi32>
    %c15_i32 = arith.constant 15 : i32
    %25 = vector.broadcast %c15_i32 : i32 to vector<1x256xi32>
    %26 = arith.cmpi slt, %22, %25 : vector<1x256xi32>
    %c0_10 = arith.constant 0 : index
    %c0_11 = arith.constant 0 : index
    %c0_12 = arith.constant 0 : index
    %27 = vector.load %arg1[%c0_10, %c0_11, %c0_12] : memref<2x4x256xf32, #tpu.memory_space<vmem>>, vector<1x4x256xf32>
    %28 = vector.shape_cast %27 : vector<1x4x256xf32> to vector<4x256xf32>
    %c0_13 = arith.constant 0 : index
    %c128 = arith.constant 128 : index
    %29 = vector.load %arg7[%c0_13, %c128] : memref<4x512xf32, #tpu.memory_space<vmem>>, vector<4x256xf32>
    tpu.vector_store %arg7[%c0_13, %c128], %28 {strides = array<i32>} : memref<4x512xf32, #tpu.memory_space<vmem>>, vector<4x256xf32>,
    %c0_14 = arith.constant 0 : index
    %c111 = arith.constant 111 : index
    %30 = vector.load %arg7[%c0_14, %c111] : memref<4x512xf32, #tpu.memory_space<vmem>>, vector<4x256xf32>
    %cst_15 = arith.constant 0.000000e+00 : f32
    %31 = vector.shape_cast %24 : vector<1x256xi1> to vector<1x256xi1>
    %32 = vector.broadcast %31 : vector<1x256xi1> to vector<4x256xi1>
    %33 = vector.broadcast %cst_15 : f32 to vector<4x256xf32>
    %34 = arith.select %32, %30, %33 : vector<4x256xi1>, vector<4x256xf32>
    %35 = arith.truncf %34 : vector<4x256xf32> to vector<4x256xbf16>
    %c0_16 = arith.constant 0 : index
    %c0_17 = arith.constant 0 : index
    %36 = vector.load %arg8[%c0_16, %c0_17] : memref<72x512xbf16, #tpu.memory_space<vmem>>, vector<4x256xbf16>
    tpu.vector_store %arg8[%c0_16, %c0_17], %35 {strides = array<i32>} : memref<72x512xbf16, #tpu.memory_space<vmem>>, vector<4x256xbf16>,
    %c0_18 = arith.constant 0 : index
    %c112 = arith.constant 112 : index
    %37 = vector.load %arg7[%c0_18, %c112] : memref<4x512xf32, #tpu.memory_space<vmem>>, vector<4x256xf32>
    %38 = arith.truncf %37 : vector<4x256xf32> to vector<4x256xbf16>
    %c8 = arith.constant 8 : index
    %c0_19 = arith.constant 0 : index
    %39 = vector.load %arg8[%c8, %c0_19] : memref<72x512xbf16, #tpu.memory_space<vmem>>, vector<4x256xbf16>
    tpu.vector_store %arg8[%c8, %c0_19], %38 {strides = array<i32>} : memref<72x512xbf16, #tpu.memory_space<vmem>>, vector<4x256xbf16>,
    %c0_20 = arith.constant 0 : index
    %c113 = arith.constant 113 : index
    %40 = vector.load %arg7[%c0_20, %c113] : memref<4x512xf32, #tpu.memory_space<vmem>>, vector<4x256xf32>
    %cst_21 = arith.constant 0.000000e+00 : f32
    %41 = vector.shape_cast %26 : vector<1x256xi1> to vector<1x256xi1>
    %42 = vector.broadcast %41 : vector<1x256xi1> to vector<4x256xi1>
    %43 = vector.broadcast %cst_21 : f32 to vector<4x256xf32>
    %44 = arith.select %42, %40, %43 : vector<4x256xi1>, vector<4x256xf32>
    %45 = arith.truncf %44 : vector<4x256xf32> to vector<4x256xbf16>
    %c16 = arith.constant 16 : index
    %c0_22 = arith.constant 0 : index
    %46 = vector.load %arg8[%c16, %c0_22] : memref<72x512xbf16, #tpu.memory_space<vmem>>, vector<4x256xbf16>
    tpu.vector_store %arg8[%c16, %c0_22], %45 {strides = array<i32>} : memref<72x512xbf16, #tpu.memory_space<vmem>>, vector<4x256xbf16>,
    %c0_23 = arith.constant 0 : index
    %c127 = arith.constant 127 : index
    %47 = vector.load %arg7[%c0_23, %c127] : memref<4x512xf32, #tpu.memory_space<vmem>>, vector<4x256xf32>
    %cst_24 = arith.constant 0.000000e+00 : f32
    %48 = vector.shape_cast %24 : vector<1x256xi1> to vector<1x256xi1>
    %49 = vector.broadcast %48 : vector<1x256xi1> to vector<4x256xi1>
    %50 = vector.broadcast %cst_24 : f32 to vector<4x256xf32>
    %51 = arith.select %49, %47, %50 : vector<4x256xi1>, vector<4x256xf32>
    %52 = arith.truncf %51 : vector<4x256xf32> to vector<4x256xbf16>
    %c24 = arith.constant 24 : index
    %c0_25 = arith.constant 0 : index
    %53 = vector.load %arg8[%c24, %c0_25] : memref<72x512xbf16, #tpu.memory_space<vmem>>, vector<4x256xbf16>
    tpu.vector_store %arg8[%c24, %c0_25], %52 {strides = array<i32>} : memref<72x512xbf16, #tpu.memory_space<vmem>>, vector<4x256xbf16>,
    %c0_26 = arith.constant 0 : index
    %c128_27 = arith.constant 128 : index
    %54 = vector.load %arg7[%c0_26, %c128_27] : memref<4x512xf32, #tpu.memory_space<vmem>>, vector<4x256xf32>
    %55 = arith.truncf %54 : vector<4x256xf32> to vector<4x256xbf16>
    %c32 = arith.constant 32 : index
    %c0_28 = arith.constant 0 : index
    %56 = vector.load %arg8[%c32, %c0_28] : memref<72x512xbf16, #tpu.memory_space<vmem>>, vector<4x256xbf16>
    tpu.vector_store %arg8[%c32, %c0_28], %55 {strides = array<i32>} : memref<72x512xbf16, #tpu.memory_space<vmem>>, vector<4x256xbf16>,
    %c0_29 = arith.constant 0 : index
    %c129 = arith.constant 129 : index
    %57 = vector.load %arg7[%c0_29, %c129] : memref<4x512xf32, #tpu.memory_space<vmem>>, vector<4x256xf32>
    %cst_30 = arith.constant 0.000000e+00 : f32
    %58 = vector.shape_cast %26 : vector<1x256xi1> to vector<1x256xi1>
    %59 = vector.broadcast %58 : vector<1x256xi1> to vector<4x256xi1>
    %60 = vector.broadcast %cst_30 : f32 to vector<4x256xf32>
    %61 = arith.select %59, %57, %60 : vector<4x256xi1>, vector<4x256xf32>
    %62 = arith.truncf %61 : vector<4x256xf32> to vector<4x256xbf16>
    %c40 = arith.constant 40 : index
    %c0_31 = arith.constant 0 : index
    %63 = vector.load %arg8[%c40, %c0_31] : memref<72x512xbf16, #tpu.memory_space<vmem>>, vector<4x256xbf16>
    tpu.vector_store %arg8[%c40, %c0_31], %62 {strides = array<i32>} : memref<72x512xbf16, #tpu.memory_space<vmem>>, vector<4x256xbf16>,
    %c0_32 = arith.constant 0 : index
    %c143 = arith.constant 143 : index
    %64 = vector.load %arg7[%c0_32, %c143] : memref<4x512xf32, #tpu.memory_space<vmem>>, vector<4x256xf32>
    %cst_33 = arith.constant 0.000000e+00 : f32
    %65 = vector.shape_cast %24 : vector<1x256xi1> to vector<1x256xi1>
    %66 = vector.broadcast %65 : vector<1x256xi1> to vector<4x256xi1>
    %67 = vector.broadcast %cst_33 : f32 to vector<4x256xf32>
    %68 = arith.select %66, %64, %67 : vector<4x256xi1>, vector<4x256xf32>
    %69 = arith.truncf %68 : vector<4x256xf32> to vector<4x256xbf16>
    %c48 = arith.constant 48 : index
    %c0_34 = arith.constant 0 : index
    %70 = vector.load %arg8[%c48, %c0_34] : memref<72x512xbf16, #tpu.memory_space<vmem>>, vector<4x256xbf16>
    tpu.vector_store %arg8[%c48, %c0_34], %69 {strides = array<i32>} : memref<72x512xbf16, #tpu.memory_space<vmem>>, vector<4x256xbf16>,
    %c0_35 = arith.constant 0 : index
    %c144 = arith.constant 144 : index
    %71 = vector.load %arg7[%c0_35, %c144] : memref<4x512xf32, #tpu.memory_space<vmem>>, vector<4x256xf32>
    %72 = arith.truncf %71 : vector<4x256xf32> to vector<4x256xbf16>
    %c56 = arith.constant 56 : index
    %c0_36 = arith.constant 0 : index
    %73 = vector.load %arg8[%c56, %c0_36] : memref<72x512xbf16, #tpu.memory_space<vmem>>, vector<4x256xbf16>
    tpu.vector_store %arg8[%c56, %c0_36], %72 {strides = array<i32>} : memref<72x512xbf16, #tpu.memory_space<vmem>>, vector<4x256xbf16>,
    %c0_37 = arith.constant 0 : index
    %c145 = arith.constant 145 : index
    %74 = vector.load %arg7[%c0_37, %c145] : memref<4x512xf32, #tpu.memory_space<vmem>>, vector<4x256xf32>
    %cst_38 = arith.constant 0.000000e+00 : f32
    %75 = vector.shape_cast %26 : vector<1x256xi1> to vector<1x256xi1>
    %76 = vector.broadcast %75 : vector<1x256xi1> to vector<4x256xi1>
    %77 = vector.broadcast %cst_38 : f32 to vector<4x256xf32>
    %78 = arith.select %76, %74, %77 : vector<4x256xi1>, vector<4x256xf32>
    %79 = arith.truncf %78 : vector<4x256xf32> to vector<4x256xbf16>
    %c64 = arith.constant 64 : index
    %c0_39 = arith.constant 0 : index
    %80 = vector.load %arg8[%c64, %c0_39] : memref<72x512xbf16, #tpu.memory_space<vmem>>, vector<4x256xbf16>
    tpu.vector_store %arg8[%c64, %c0_39], %79 {strides = array<i32>} : memref<72x512xbf16, #tpu.memory_space<vmem>>, vector<4x256xbf16>,
    %c1 = arith.constant 1 : index
    %c0_40 = arith.constant 0 : index
    %c0_41 = arith.constant 0 : index
    %81 = vector.load %arg1[%c1, %c0_40, %c0_41] : memref<2x4x256xf32, #tpu.memory_space<vmem>>, vector<1x4x256xf32>
    %82 = vector.shape_cast %81 : vector<1x4x256xf32> to vector<4x256xf32>
    %c0_42 = arith.constant 0 : index
    %c128_43 = arith.constant 128 : index
    %83 = vector.load %arg7[%c0_42, %c128_43] : memref<4x512xf32, #tpu.memory_space<vmem>>, vector<4x256xf32>
    tpu.vector_store %arg7[%c0_42, %c128_43], %82 {strides = array<i32>} : memref<4x512xf32, #tpu.memory_space<vmem>>, vector<4x256xf32>,
    %c0_44 = arith.constant 0 : index
    %c111_45 = arith.constant 111 : index
    %84 = vector.load %arg7[%c0_44, %c111_45] : memref<4x512xf32, #tpu.memory_space<vmem>>, vector<4x256xf32>
    %cst_46 = arith.constant 0.000000e+00 : f32
    %85 = vector.shape_cast %24 : vector<1x256xi1> to vector<1x256xi1>
    %86 = vector.broadcast %85 : vector<1x256xi1> to vector<4x256xi1>
    %87 = vector.broadcast %cst_46 : f32 to vector<4x256xf32>
    %88 = arith.select %86, %84, %87 : vector<4x256xi1>, vector<4x256xf32>
    %89 = arith.truncf %88 : vector<4x256xf32> to vector<4x256xbf16>
    %c0_47 = arith.constant 0 : index
    %c256 = arith.constant 256 : index
    %90 = vector.load %arg8[%c0_47, %c256] : memref<72x512xbf16, #tpu.memory_space<vmem>>, vector<4x256xbf16>
    tpu.vector_store %arg8[%c0_47, %c256], %89 {strides = array<i32>} : memref<72x512xbf16, #tpu.memory_space<vmem>>, vector<4x256xbf16>,
    %c0_48 = arith.constant 0 : index
    %c112_49 = arith.constant 112 : index
    %91 = vector.load %arg7[%c0_48, %c112_49] : memref<4x512xf32, #tpu.memory_space<vmem>>, vector<4x256xf32>
    %92 = arith.truncf %91 : vector<4x256xf32> to vector<4x256xbf16>
    %c8_50 = arith.constant 8 : index
    %c256_51 = arith.constant 256 : index
    %93 = vector.load %arg8[%c8_50, %c256_51] : memref<72x512xbf16, #tpu.memory_space<vmem>>, vector<4x256xbf16>
    tpu.vector_store %arg8[%c8_50, %c256_51], %92 {strides = array<i32>} : memref<72x512xbf16, #tpu.memory_space<vmem>>, vector<4x256xbf16>,
    %c0_52 = arith.constant 0 : index
    %c113_53 = arith.constant 113 : index
    %94 = vector.load %arg7[%c0_52, %c113_53] : memref<4x512xf32, #tpu.memory_space<vmem>>, vector<4x256xf32>
    %cst_54 = arith.constant 0.000000e+00 : f32
    %95 = vector.shape_cast %26 : vector<1x256xi1> to vector<1x256xi1>
    %96 = vector.broadcast %95 : vector<1x256xi1> to vector<4x256xi1>
    %97 = vector.broadcast %cst_54 : f32 to vector<4x256xf32>
    %98 = arith.select %96, %94, %97 : vector<4x256xi1>, vector<4x256xf32>
    %99 = arith.truncf %98 : vector<4x256xf32> to vector<4x256xbf16>
    %c16_55 = arith.constant 16 : index
    %c256_56 = arith.constant 256 : index
    %100 = vector.load %arg8[%c16_55, %c256_56] : memref<72x512xbf16, #tpu.memory_space<vmem>>, vector<4x256xbf16>
    tpu.vector_store %arg8[%c16_55, %c256_56], %99 {strides = array<i32>} : memref<72x512xbf16, #tpu.memory_space<vmem>>, vector<4x256xbf16>,
    %c0_57 = arith.constant 0 : index
    %c127_58 = arith.constant 127 : index
    %101 = vector.load %arg7[%c0_57, %c127_58] : memref<4x512xf32, #tpu.memory_space<vmem>>, vector<4x256xf32>
    %cst_59 = arith.constant 0.000000e+00 : f32
    %102 = vector.shape_cast %24 : vector<1x256xi1> to vector<1x256xi1>
    %103 = vector.broadcast %102 : vector<1x256xi1> to vector<4x256xi1>
    %104 = vector.broadcast %cst_59 : f32 to vector<4x256xf32>
    %105 = arith.select %103, %101, %104 : vector<4x256xi1>, vector<4x256xf32>
    %106 = arith.truncf %105 : vector<4x256xf32> to vector<4x256xbf16>
    %c24_60 = arith.constant 24 : index
    %c256_61 = arith.constant 256 : index
    %107 = vector.load %arg8[%c24_60, %c256_61] : memref<72x512xbf16, #tpu.memory_space<vmem>>, vector<4x256xbf16>
    tpu.vector_store %arg8[%c24_60, %c256_61], %106 {strides = array<i32>} : memref<72x512xbf16, #tpu.memory_space<vmem>>, vector<4x256xbf16>,
    %c0_62 = arith.constant 0 : index
    %c128_63 = arith.constant 128 : index
    %108 = vector.load %arg7[%c0_62, %c128_63] : memref<4x512xf32, #tpu.memory_space<vmem>>, vector<4x256xf32>
    %109 = arith.truncf %108 : vector<4x256xf32> to vector<4x256xbf16>
    %c32_64 = arith.constant 32 : index
    %c256_65 = arith.constant 256 : index
    %110 = vector.load %arg8[%c32_64, %c256_65] : memref<72x512xbf16, #tpu.memory_space<vmem>>, vector<4x256xbf16>
    tpu.vector_store %arg8[%c32_64, %c256_65], %109 {strides = array<i32>} : memref<72x512xbf16, #tpu.memory_space<vmem>>, vector<4x256xbf16>,
    %c0_66 = arith.constant 0 : index
    %c129_67 = arith.constant 129 : index
    %111 = vector.load %arg7[%c0_66, %c129_67] : memref<4x512xf32, #tpu.memory_space<vmem>>, vector<4x256xf32>
    %cst_68 = arith.constant 0.000000e+00 : f32
    %112 = vector.shape_cast %26 : vector<1x256xi1> to vector<1x256xi1>
    %113 = vector.broadcast %112 : vector<1x256xi1> to vector<4x256xi1>
    %114 = vector.broadcast %cst_68 : f32 to vector<4x256xf32>
    %115 = arith.select %113, %111, %114 : vector<4x256xi1>, vector<4x256xf32>
    %116 = arith.truncf %115 : vector<4x256xf32> to vector<4x256xbf16>
    %c40_69 = arith.constant 40 : index
    %c256_70 = arith.constant 256 : index
    %117 = vector.load %arg8[%c40_69, %c256_70] : memref<72x512xbf16, #tpu.memory_space<vmem>>, vector<4x256xbf16>
    tpu.vector_store %arg8[%c40_69, %c256_70], %116 {strides = array<i32>} : memref<72x512xbf16, #tpu.memory_space<vmem>>, vector<4x256xbf16>,
    %c0_71 = arith.constant 0 : index
    %c143_72 = arith.constant 143 : index
    %118 = vector.load %arg7[%c0_71, %c143_72] : memref<4x512xf32, #tpu.memory_space<vmem>>, vector<4x256xf32>
    %cst_73 = arith.constant 0.000000e+00 : f32
    %119 = vector.shape_cast %24 : vector<1x256xi1> to vector<1x256xi1>
    %120 = vector.broadcast %119 : vector<1x256xi1> to vector<4x256xi1>
    %121 = vector.broadcast %cst_73 : f32 to vector<4x256xf32>
    %122 = arith.select %120, %118, %121 : vector<4x256xi1>, vector<4x256xf32>
    %123 = arith.truncf %122 : vector<4x256xf32> to vector<4x256xbf16>
    %c48_74 = arith.constant 48 : index
    %c256_75 = arith.constant 256 : index
    %124 = vector.load %arg8[%c48_74, %c256_75] : memref<72x512xbf16, #tpu.memory_space<vmem>>, vector<4x256xbf16>
    tpu.vector_store %arg8[%c48_74, %c256_75], %123 {strides = array<i32>} : memref<72x512xbf16, #tpu.memory_space<vmem>>, vector<4x256xbf16>,
    %c0_76 = arith.constant 0 : index
    %c144_77 = arith.constant 144 : index
    %125 = vector.load %arg7[%c0_76, %c144_77] : memref<4x512xf32, #tpu.memory_space<vmem>>, vector<4x256xf32>
    %126 = arith.truncf %125 : vector<4x256xf32> to vector<4x256xbf16>
    %c56_78 = arith.constant 56 : index
    %c256_79 = arith.constant 256 : index
    %127 = vector.load %arg8[%c56_78, %c256_79] : memref<72x512xbf16, #tpu.memory_space<vmem>>, vector<4x256xbf16>
    tpu.vector_store %arg8[%c56_78, %c256_79], %126 {strides = array<i32>} : memref<72x512xbf16, #tpu.memory_space<vmem>>, vector<4x256xbf16>,
    %c0_80 = arith.constant 0 : index
    %c145_81 = arith.constant 145 : index
    %128 = vector.load %arg7[%c0_80, %c145_81] : memref<4x512xf32, #tpu.memory_space<vmem>>, vector<4x256xf32>
    %cst_82 = arith.constant 0.000000e+00 : f32
    %129 = vector.shape_cast %26 : vector<1x256xi1> to vector<1x256xi1>
    %130 = vector.broadcast %129 : vector<1x256xi1> to vector<4x256xi1>
    %131 = vector.broadcast %cst_82 : f32 to vector<4x256xf32>
    %132 = arith.select %130, %128, %131 : vector<4x256xi1>, vector<4x256xf32>
    %133 = arith.truncf %132 : vector<4x256xf32> to vector<4x256xbf16>
    %c64_83 = arith.constant 64 : index
    %c256_84 = arith.constant 256 : index
    %134 = vector.load %arg8[%c64_83, %c256_84] : memref<72x512xbf16, #tpu.memory_space<vmem>>, vector<4x256xbf16>
    tpu.vector_store %arg8[%c64_83, %c256_84], %133 {strides = array<i32>} : memref<72x512xbf16, #tpu.memory_space<vmem>>, vector<4x256xbf16>,
    %c0_85 = arith.constant 0 : index
    %c0_86 = arith.constant 0 : index
    %135 = vector.load %arg2[%c0_85, %c0_86] : memref<4x72xbf16, #tpu.memory_space<vmem>>, vector<4x72xbf16>
    %c0_87 = arith.constant 0 : index
    %c0_88 = arith.constant 0 : index
    %136 = vector.load %arg8[%c0_87, %c0_88] : memref<72x512xbf16, #tpu.memory_space<vmem>>, vector<72x512xbf16>
    %cst_89 = arith.constant dense<0.000000e+00> : vector<4x512xf32>
    %137 = tpu.matmul %135, %136, %cst_89 {dimension_numbers = #tpu.dot_dimension_numbers<[1], [0], [0], [1], [0, 0, 1, 1], [], []>} : vector<4x72xbf16>, vector<72x512xbf16>, vector<4x512xf32> -> vector<4x512xf32>
    %c0_90 = arith.constant 0 : index
    %c0_91 = arith.constant 0 : index
    %138 = vector.load %arg3[%c0_90, %c0_91] : memref<4x1xf32, #tpu.memory_space<vmem>>, vector<4x1xf32>
    %139 = vector.broadcast %138 : vector<4x1xf32> to vector<4x512xf32>
    %140 = arith.addf %137, %139 : vector<4x512xf32>
    %cst_92 = arith.constant 0.000000e+00 : f32
    %141 = vector.broadcast %cst_92 : f32 to vector<4x512xf32>
    %142 = arith.maximumf %140, %141 : vector<4x512xf32>
    %143 = vector.extract_strided_slice %142 {offsets = [0, 0], sizes = [4, 256], strides = [1, 1]} : vector<4x512xf32> to vector<4x256xf32>
    %c0_93 = arith.constant 0 : index
    %c128_94 = arith.constant 128 : index
    %144 = vector.load %arg7[%c0_93, %c128_94] : memref<4x512xf32, #tpu.memory_space<vmem>>, vector<4x256xf32>
    tpu.vector_store %arg7[%c0_93, %c128_94], %143 {strides = array<i32>} : memref<4x512xf32, #tpu.memory_space<vmem>>, vector<4x256xf32>,
    %c0_95 = arith.constant 0 : index
    %c111_96 = arith.constant 111 : index
    %145 = vector.load %arg7[%c0_95, %c111_96] : memref<4x512xf32, #tpu.memory_space<vmem>>, vector<4x256xf32>
    %cst_97 = arith.constant 0.000000e+00 : f32
    %146 = vector.shape_cast %24 : vector<1x256xi1> to vector<1x256xi1>
    %147 = vector.broadcast %146 : vector<1x256xi1> to vector<4x256xi1>
    %148 = vector.broadcast %cst_97 : f32 to vector<4x256xf32>
    %149 = arith.select %147, %145, %148 : vector<4x256xi1>, vector<4x256xf32>
    %150 = arith.truncf %149 : vector<4x256xf32> to vector<4x256xbf16>
    %c0_98 = arith.constant 0 : index
    %c0_99 = arith.constant 0 : index
    %151 = vector.load %arg8[%c0_98, %c0_99] : memref<72x512xbf16, #tpu.memory_space<vmem>>, vector<4x256xbf16>
    tpu.vector_store %arg8[%c0_98, %c0_99], %150 {strides = array<i32>} : memref<72x512xbf16, #tpu.memory_space<vmem>>, vector<4x256xbf16>,
    %c0_100 = arith.constant 0 : index
    %c112_101 = arith.constant 112 : index
    %152 = vector.load %arg7[%c0_100, %c112_101] : memref<4x512xf32, #tpu.memory_space<vmem>>, vector<4x256xf32>
    %153 = arith.truncf %152 : vector<4x256xf32> to vector<4x256xbf16>
    %c8_102 = arith.constant 8 : index
    %c0_103 = arith.constant 0 : index
    %154 = vector.load %arg8[%c8_102, %c0_103] : memref<72x512xbf16, #tpu.memory_space<vmem>>, vector<4x256xbf16>
    tpu.vector_store %arg8[%c8_102, %c0_103], %153 {strides = array<i32>} : memref<72x512xbf16, #tpu.memory_space<vmem>>, vector<4x256xbf16>,
    %c0_104 = arith.constant 0 : index
    %c113_105 = arith.constant 113 : index
    %155 = vector.load %arg7[%c0_104, %c113_105] : memref<4x512xf32, #tpu.memory_space<vmem>>, vector<4x256xf32>
    %cst_106 = arith.constant 0.000000e+00 : f32
    %156 = vector.shape_cast %26 : vector<1x256xi1> to vector<1x256xi1>
    %157 = vector.broadcast %156 : vector<1x256xi1> to vector<4x256xi1>
    %158 = vector.broadcast %cst_106 : f32 to vector<4x256xf32>
    %159 = arith.select %157, %155, %158 : vector<4x256xi1>, vector<4x256xf32>
    %160 = arith.truncf %159 : vector<4x256xf32> to vector<4x256xbf16>
    %c16_107 = arith.constant 16 : index
    %c0_108 = arith.constant 0 : index
    %161 = vector.load %arg8[%c16_107, %c0_108] : memref<72x512xbf16, #tpu.memory_space<vmem>>, vector<4x256xbf16>
    tpu.vector_store %arg8[%c16_107, %c0_108], %160 {strides = array<i32>} : memref<72x512xbf16, #tpu.memory_space<vmem>>, vector<4x256xbf16>,
    %c0_109 = arith.constant 0 : index
    %c127_110 = arith.constant 127 : index
    %162 = vector.load %arg7[%c0_109, %c127_110] : memref<4x512xf32, #tpu.memory_space<vmem>>, vector<4x256xf32>
    %cst_111 = arith.constant 0.000000e+00 : f32
    %163 = vector.shape_cast %24 : vector<1x256xi1> to vector<1x256xi1>
    %164 = vector.broadcast %163 : vector<1x256xi1> to vector<4x256xi1>
    %165 = vector.broadcast %cst_111 : f32 to vector<4x256xf32>
    %166 = arith.select %164, %162, %165 : vector<4x256xi1>, vector<4x256xf32>
    %167 = arith.truncf %166 : vector<4x256xf32> to vector<4x256xbf16>
    %c24_112 = arith.constant 24 : index
    %c0_113 = arith.constant 0 : index
    %168 = vector.load %arg8[%c24_112, %c0_113] : memref<72x512xbf16, #tpu.memory_space<vmem>>, vector<4x256xbf16>
    tpu.vector_store %arg8[%c24_112, %c0_113], %167 {strides = array<i32>} : memref<72x512xbf16, #tpu.memory_space<vmem>>, vector<4x256xbf16>,
    %c0_114 = arith.constant 0 : index
    %c128_115 = arith.constant 128 : index
    %169 = vector.load %arg7[%c0_114, %c128_115] : memref<4x512xf32, #tpu.memory_space<vmem>>, vector<4x256xf32>
    %170 = arith.truncf %169 : vector<4x256xf32> to vector<4x256xbf16>
    %c32_116 = arith.constant 32 : index
    %c0_117 = arith.constant 0 : index
    %171 = vector.load %arg8[%c32_116, %c0_117] : memref<72x512xbf16, #tpu.memory_space<vmem>>, vector<4x256xbf16>
    tpu.vector_store %arg8[%c32_116, %c0_117], %170 {strides = array<i32>} : memref<72x512xbf16, #tpu.memory_space<vmem>>, vector<4x256xbf16>,
    %c0_118 = arith.constant 0 : index
    %c129_119 = arith.constant 129 : index
    %172 = vector.load %arg7[%c0_118, %c129_119] : memref<4x512xf32, #tpu.memory_space<vmem>>, vector<4x256xf32>
    %cst_120 = arith.constant 0.000000e+00 : f32
    %173 = vector.shape_cast %26 : vector<1x256xi1> to vector<1x256xi1>
    %174 = vector.broadcast %173 : vector<1x256xi1> to vector<4x256xi1>
    %175 = vector.broadcast %cst_120 : f32 to vector<4x256xf32>
    %176 = arith.select %174, %172, %175 : vector<4x256xi1>, vector<4x256xf32>
    %177 = arith.truncf %176 : vector<4x256xf32> to vector<4x256xbf16>
    %c40_121 = arith.constant 40 : index
    %c0_122 = arith.constant 0 : index
    %178 = vector.load %arg8[%c40_121, %c0_122] : memref<72x512xbf16, #tpu.memory_space<vmem>>, vector<4x256xbf16>
    tpu.vector_store %arg8[%c40_121, %c0_122], %177 {strides = array<i32>} : memref<72x512xbf16, #tpu.memory_space<vmem>>, vector<4x256xbf16>,
    %c0_123 = arith.constant 0 : index
    %c143_124 = arith.constant 143 : index
    %179 = vector.load %arg7[%c0_123, %c143_124] : memref<4x512xf32, #tpu.memory_space<vmem>>, vector<4x256xf32>
    %cst_125 = arith.constant 0.000000e+00 : f32
    %180 = vector.shape_cast %24 : vector<1x256xi1> to vector<1x256xi1>
    %181 = vector.broadcast %180 : vector<1x256xi1> to vector<4x256xi1>
    %182 = vector.broadcast %cst_125 : f32 to vector<4x256xf32>
    %183 = arith.select %181, %179, %182 : vector<4x256xi1>, vector<4x256xf32>
    %184 = arith.truncf %183 : vector<4x256xf32> to vector<4x256xbf16>
    %c48_126 = arith.constant 48 : index
    %c0_127 = arith.constant 0 : index
    %185 = vector.load %arg8[%c48_126, %c0_127] : memref<72x512xbf16, #tpu.memory_space<vmem>>, vector<4x256xbf16>
    tpu.vector_store %arg8[%c48_126, %c0_127], %184 {strides = array<i32>} : memref<72x512xbf16, #tpu.memory_space<vmem>>, vector<4x256xbf16>,
    %c0_128 = arith.constant 0 : index
    %c144_129 = arith.constant 144 : index
    %186 = vector.load %arg7[%c0_128, %c144_129] : memref<4x512xf32, #tpu.memory_space<vmem>>, vector<4x256xf32>
    %187 = arith.truncf %186 : vector<4x256xf32> to vector<4x256xbf16>
    %c56_130 = arith.constant 56 : index
    %c0_131 = arith.constant 0 : index
    %188 = vector.load %arg8[%c56_130, %c0_131] : memref<72x512xbf16, #tpu.memory_space<vmem>>, vector<4x256xbf16>
    tpu.vector_store %arg8[%c56_130, %c0_131], %187 {strides = array<i32>} : memref<72x512xbf16, #tpu.memory_space<vmem>>, vector<4x256xbf16>,
    %c0_132 = arith.constant 0 : index
    %c145_133 = arith.constant 145 : index
    %189 = vector.load %arg7[%c0_132, %c145_133] : memref<4x512xf32, #tpu.memory_space<vmem>>, vector<4x256xf32>
    %cst_134 = arith.constant 0.000000e+00 : f32
    %190 = vector.shape_cast %26 : vector<1x256xi1> to vector<1x256xi1>
    %191 = vector.broadcast %190 : vector<1x256xi1> to vector<4x256xi1>
    %192 = vector.broadcast %cst_134 : f32 to vector<4x256xf32>
    %193 = arith.select %191, %189, %192 : vector<4x256xi1>, vector<4x256xf32>
    %194 = arith.truncf %193 : vector<4x256xf32> to vector<4x256xbf16>
    %c64_135 = arith.constant 64 : index
    %c0_136 = arith.constant 0 : index
    %195 = vector.load %arg8[%c64_135, %c0_136] : memref<72x512xbf16, #tpu.memory_space<vmem>>, vector<4x256xbf16>
    tpu.vector_store %arg8[%c64_135, %c0_136], %194 {strides = array<i32>} : memref<72x512xbf16, #tpu.memory_space<vmem>>, vector<4x256xbf16>,
    %196 = vector.extract_strided_slice %142 {offsets = [0, 256], sizes = [4, 256], strides = [1, 1]} : vector<4x512xf32> to vector<4x256xf32>
    %c0_137 = arith.constant 0 : index
    %c128_138 = arith.constant 128 : index
    %197 = vector.load %arg7[%c0_137, %c128_138] : memref<4x512xf32, #tpu.memory_space<vmem>>, vector<4x256xf32>
    tpu.vector_store %arg7[%c0_137, %c128_138], %196 {strides = array<i32>} : memref<4x512xf32, #tpu.memory_space<vmem>>, vector<4x256xf32>,
    %c0_139 = arith.constant 0 : index
    %c111_140 = arith.constant 111 : index
    %198 = vector.load %arg7[%c0_139, %c111_140] : memref<4x512xf32, #tpu.memory_space<vmem>>, vector<4x256xf32>
    %cst_141 = arith.constant 0.000000e+00 : f32
    %199 = vector.shape_cast %24 : vector<1x256xi1> to vector<1x256xi1>
    %200 = vector.broadcast %199 : vector<1x256xi1> to vector<4x256xi1>
    %201 = vector.broadcast %cst_141 : f32 to vector<4x256xf32>
    %202 = arith.select %200, %198, %201 : vector<4x256xi1>, vector<4x256xf32>
    %203 = arith.truncf %202 : vector<4x256xf32> to vector<4x256xbf16>
    %c0_142 = arith.constant 0 : index
    %c256_143 = arith.constant 256 : index
    %204 = vector.load %arg8[%c0_142, %c256_143] : memref<72x512xbf16, #tpu.memory_space<vmem>>, vector<4x256xbf16>
    tpu.vector_store %arg8[%c0_142, %c256_143], %203 {strides = array<i32>} : memref<72x512xbf16, #tpu.memory_space<vmem>>, vector<4x256xbf16>,
    %c0_144 = arith.constant 0 : index
    %c112_145 = arith.constant 112 : index
    %205 = vector.load %arg7[%c0_144, %c112_145] : memref<4x512xf32, #tpu.memory_space<vmem>>, vector<4x256xf32>
    %206 = arith.truncf %205 : vector<4x256xf32> to vector<4x256xbf16>
    %c8_146 = arith.constant 8 : index
    %c256_147 = arith.constant 256 : index
    %207 = vector.load %arg8[%c8_146, %c256_147] : memref<72x512xbf16, #tpu.memory_space<vmem>>, vector<4x256xbf16>
    tpu.vector_store %arg8[%c8_146, %c256_147], %206 {strides = array<i32>} : memref<72x512xbf16, #tpu.memory_space<vmem>>, vector<4x256xbf16>,
    %c0_148 = arith.constant 0 : index
    %c113_149 = arith.constant 113 : index
    %208 = vector.load %arg7[%c0_148, %c113_149] : memref<4x512xf32, #tpu.memory_space<vmem>>, vector<4x256xf32>
    %cst_150 = arith.constant 0.000000e+00 : f32
    %209 = vector.shape_cast %26 : vector<1x256xi1> to vector<1x256xi1>
    %210 = vector.broadcast %209 : vector<1x256xi1> to vector<4x256xi1>
    %211 = vector.broadcast %cst_150 : f32 to vector<4x256xf32>
    %212 = arith.select %210, %208, %211 : vector<4x256xi1>, vector<4x256xf32>
    %213 = arith.truncf %212 : vector<4x256xf32> to vector<4x256xbf16>
    %c16_151 = arith.constant 16 : index
    %c256_152 = arith.constant 256 : index
    %214 = vector.load %arg8[%c16_151, %c256_152] : memref<72x512xbf16, #tpu.memory_space<vmem>>, vector<4x256xbf16>
    tpu.vector_store %arg8[%c16_151, %c256_152], %213 {strides = array<i32>} : memref<72x512xbf16, #tpu.memory_space<vmem>>, vector<4x256xbf16>,
    %c0_153 = arith.constant 0 : index
    %c127_154 = arith.constant 127 : index
    %215 = vector.load %arg7[%c0_153, %c127_154] : memref<4x512xf32, #tpu.memory_space<vmem>>, vector<4x256xf32>
    %cst_155 = arith.constant 0.000000e+00 : f32
    %216 = vector.shape_cast %24 : vector<1x256xi1> to vector<1x256xi1>
    %217 = vector.broadcast %216 : vector<1x256xi1> to vector<4x256xi1>
    %218 = vector.broadcast %cst_155 : f32 to vector<4x256xf32>
    %219 = arith.select %217, %215, %218 : vector<4x256xi1>, vector<4x256xf32>
    %220 = arith.truncf %219 : vector<4x256xf32> to vector<4x256xbf16>
    %c24_156 = arith.constant 24 : index
    %c256_157 = arith.constant 256 : index
    %221 = vector.load %arg8[%c24_156, %c256_157] : memref<72x512xbf16, #tpu.memory_space<vmem>>, vector<4x256xbf16>
    tpu.vector_store %arg8[%c24_156, %c256_157], %220 {strides = array<i32>} : memref<72x512xbf16, #tpu.memory_space<vmem>>, vector<4x256xbf16>,
    %c0_158 = arith.constant 0 : index
    %c128_159 = arith.constant 128 : index
    %222 = vector.load %arg7[%c0_158, %c128_159] : memref<4x512xf32, #tpu.memory_space<vmem>>, vector<4x256xf32>
    %223 = arith.truncf %222 : vector<4x256xf32> to vector<4x256xbf16>
    %c32_160 = arith.constant 32 : index
    %c256_161 = arith.constant 256 : index
    %224 = vector.load %arg8[%c32_160, %c256_161] : memref<72x512xbf16, #tpu.memory_space<vmem>>, vector<4x256xbf16>
    tpu.vector_store %arg8[%c32_160, %c256_161], %223 {strides = array<i32>} : memref<72x512xbf16, #tpu.memory_space<vmem>>, vector<4x256xbf16>,
    %c0_162 = arith.constant 0 : index
    %c129_163 = arith.constant 129 : index
    %225 = vector.load %arg7[%c0_162, %c129_163] : memref<4x512xf32, #tpu.memory_space<vmem>>, vector<4x256xf32>
    %cst_164 = arith.constant 0.000000e+00 : f32
    %226 = vector.shape_cast %26 : vector<1x256xi1> to vector<1x256xi1>
    %227 = vector.broadcast %226 : vector<1x256xi1> to vector<4x256xi1>
    %228 = vector.broadcast %cst_164 : f32 to vector<4x256xf32>
    %229 = arith.select %227, %225, %228 : vector<4x256xi1>, vector<4x256xf32>
    %230 = arith.truncf %229 : vector<4x256xf32> to vector<4x256xbf16>
    %c40_165 = arith.constant 40 : index
    %c256_166 = arith.constant 256 : index
    %231 = vector.load %arg8[%c40_165, %c256_166] : memref<72x512xbf16, #tpu.memory_space<vmem>>, vector<4x256xbf16>
    tpu.vector_store %arg8[%c40_165, %c256_166], %230 {strides = array<i32>} : memref<72x512xbf16, #tpu.memory_space<vmem>>, vector<4x256xbf16>,
    %c0_167 = arith.constant 0 : index
    %c143_168 = arith.constant 143 : index
    %232 = vector.load %arg7[%c0_167, %c143_168] : memref<4x512xf32, #tpu.memory_space<vmem>>, vector<4x256xf32>
    %cst_169 = arith.constant 0.000000e+00 : f32
    %233 = vector.shape_cast %24 : vector<1x256xi1> to vector<1x256xi1>
    %234 = vector.broadcast %233 : vector<1x256xi1> to vector<4x256xi1>
    %235 = vector.broadcast %cst_169 : f32 to vector<4x256xf32>
    %236 = arith.select %234, %232, %235 : vector<4x256xi1>, vector<4x256xf32>
    %237 = arith.truncf %236 : vector<4x256xf32> to vector<4x256xbf16>
    %c48_170 = arith.constant 48 : index
    %c256_171 = arith.constant 256 : index
    %238 = vector.load %arg8[%c48_170, %c256_171] : memref<72x512xbf16, #tpu.memory_space<vmem>>, vector<4x256xbf16>
    tpu.vector_store %arg8[%c48_170, %c256_171], %237 {strides = array<i32>} : memref<72x512xbf16, #tpu.memory_space<vmem>>, vector<4x256xbf16>,
    %c0_172 = arith.constant 0 : index
    %c144_173 = arith.constant 144 : index
    %239 = vector.load %arg7[%c0_172, %c144_173] : memref<4x512xf32, #tpu.memory_space<vmem>>, vector<4x256xf32>
    %240 = arith.truncf %239 : vector<4x256xf32> to vector<4x256xbf16>
    %c56_174 = arith.constant 56 : index
    %c256_175 = arith.constant 256 : index
    %241 = vector.load %arg8[%c56_174, %c256_175] : memref<72x512xbf16, #tpu.memory_space<vmem>>, vector<4x256xbf16>
    tpu.vector_store %arg8[%c56_174, %c256_175], %240 {strides = array<i32>} : memref<72x512xbf16, #tpu.memory_space<vmem>>, vector<4x256xbf16>,
    %c0_176 = arith.constant 0 : index
    %c145_177 = arith.constant 145 : index
    %242 = vector.load %arg7[%c0_176, %c145_177] : memref<4x512xf32, #tpu.memory_space<vmem>>, vector<4x256xf32>
    %cst_178 = arith.constant 0.000000e+00 : f32
    %243 = vector.shape_cast %26 : vector<1x256xi1> to vector<1x256xi1>
    %244 = vector.broadcast %243 : vector<1x256xi1> to vector<4x256xi1>
    %245 = vector.broadcast %cst_178 : f32 to vector<4x256xf32>
    %246 = arith.select %244, %242, %245 : vector<4x256xi1>, vector<4x256xf32>
    %247 = arith.truncf %246 : vector<4x256xf32> to vector<4x256xbf16>
    %c64_179 = arith.constant 64 : index
    %c256_180 = arith.constant 256 : index
    %248 = vector.load %arg8[%c64_179, %c256_180] : memref<72x512xbf16, #tpu.memory_space<vmem>>, vector<4x256xbf16>
    tpu.vector_store %arg8[%c64_179, %c256_180], %247 {strides = array<i32>} : memref<72x512xbf16, #tpu.memory_space<vmem>>, vector<4x256xbf16>,
    %c0_181 = arith.constant 0 : index
    %c0_182 = arith.constant 0 : index
    %249 = vector.load %arg4[%c0_181, %c0_182] : memref<4x72xbf16, #tpu.memory_space<vmem>>, vector<4x72xbf16>
    %c0_183 = arith.constant 0 : index
    %c0_184 = arith.constant 0 : index
    %250 = vector.load %arg8[%c0_183, %c0_184] : memref<72x512xbf16, #tpu.memory_space<vmem>>, vector<72x512xbf16>
    %cst_185 = arith.constant dense<0.000000e+00> : vector<4x512xf32>
    %251 = tpu.matmul %249, %250, %cst_185 {dimension_numbers = #tpu.dot_dimension_numbers<[1], [0], [0], [1], [0, 0, 1, 1], [], []>} : vector<4x72xbf16>, vector<72x512xbf16>, vector<4x512xf32> -> vector<4x512xf32>
    %c0_186 = arith.constant 0 : index
    %c0_187 = arith.constant 0 : index
    %252 = vector.load %arg5[%c0_186, %c0_187] : memref<4x1xf32, #tpu.memory_space<vmem>>, vector<4x1xf32>
    %253 = vector.broadcast %252 : vector<4x1xf32> to vector<4x512xf32>
    %254 = arith.addf %251, %253 : vector<4x512xf32>
    %255 = vector.extract_strided_slice %254 {offsets = [0, 0], sizes = [4, 256], strides = [1, 1]} : vector<4x512xf32> to vector<4x256xf32>
    %c0_188 = arith.constant 0 : index
    %c0_189 = arith.constant 0 : index
    %c0_190 = arith.constant 0 : index
    %256 = vector.load %arg1[%c0_188, %c0_189, %c0_190] : memref<2x4x256xf32, #tpu.memory_space<vmem>>, vector<1x4x256xf32>
    %257 = vector.shape_cast %256 : vector<1x4x256xf32> to vector<4x256xf32>
    %258 = arith.addf %255, %257 : vector<4x256xf32>
    %cst_191 = arith.constant 0.000000e+00 : f32
    %259 = vector.broadcast %cst_191 : f32 to vector<4x256xf32>
    %260 = arith.maximumf %258, %259 : vector<4x256xf32>
    %c0_192 = arith.constant 0 : index
    %c0_193 = arith.constant 0 : index
    %c0_194 = arith.constant 0 : index
    %261 = vector.load %arg6[%c0_192, %c0_193, %c0_194] : memref<2x4x256xf32, #tpu.memory_space<vmem>>, vector<1x4x256xf32>
    %262 = vector.shape_cast %261 : vector<1x4x256xf32> to vector<4x256xf32>
    %263 = vector.shape_cast %260 : vector<4x256xf32> to vector<1x4x256xf32>
    tpu.vector_store %arg6[%c0_192, %c0_193, %c0_194], %263 {strides = array<i32>} : memref<2x4x256xf32, #tpu.memory_space<vmem>>, vector<1x4x256xf32>,
    %264 = vector.extract_strided_slice %254 {offsets = [0, 256], sizes = [4, 256], strides = [1, 1]} : vector<4x512xf32> to vector<4x256xf32>
    %c1_195 = arith.constant 1 : index
    %c0_196 = arith.constant 0 : index
    %c0_197 = arith.constant 0 : index
    %265 = vector.load %arg1[%c1_195, %c0_196, %c0_197] : memref<2x4x256xf32, #tpu.memory_space<vmem>>, vector<1x4x256xf32>
    %266 = vector.shape_cast %265 : vector<1x4x256xf32> to vector<4x256xf32>
    %267 = arith.addf %264, %266 : vector<4x256xf32>
    %cst_198 = arith.constant 0.000000e+00 : f32
    %268 = vector.broadcast %cst_198 : f32 to vector<4x256xf32>
    %269 = arith.maximumf %267, %268 : vector<4x256xf32>
    %c1_199 = arith.constant 1 : index
    %c0_200 = arith.constant 0 : index
    %c0_201 = arith.constant 0 : index
    %270 = vector.load %arg6[%c1_199, %c0_200, %c0_201] : memref<2x4x256xf32, #tpu.memory_space<vmem>>, vector<1x4x256xf32>
    %271 = vector.shape_cast %270 : vector<1x4x256xf32> to vector<4x256xf32>
    %272 = vector.shape_cast %269 : vector<4x256xf32> to vector<1x4x256xf32>
    tpu.vector_store %arg6[%c1_199, %c0_200, %c0_201], %272 {strides = array<i32>} : memref<2x4x256xf32, #tpu.memory_space<vmem>>, vector<1x4x256xf32>,
    return
  }
  func.func @transform_0(%arg0: i32) -> (i32, i32, i32) {
    %c0_i32 = arith.constant 0 : i32
    %c0_i32_0 = arith.constant 0 : i32
    %c0_i32_1 = arith.constant 0 : i32
    return %arg0, %c0_i32, %c0_i32_0 : i32, i32, i32
  }
  func.func @transform_1(%arg0: i32) -> (i32, i32) {
    %c0_i32 = arith.constant 0 : i32
    %c0_i32_0 = arith.constant 0 : i32
    %c0_i32_1 = arith.constant 0 : i32
    return %c0_i32, %c0_i32_0 : i32, i32
  }
  func.func @transform_2(%arg0: i32) -> (i32, i32) {
    %c0_i32 = arith.constant 0 : i32
    %c0_i32_0 = arith.constant 0 : i32
    %c0_i32_1 = arith.constant 0 : i32
    return %c0_i32, %c0_i32_0 : i32, i32
  }
  func.func @transform_3(%arg0: i32) -> (i32, i32) {
    %c0_i32 = arith.constant 0 : i32
    %c0_i32_0 = arith.constant 0 : i32
    %c0_i32_1 = arith.constant 0 : i32
    return %c0_i32, %c0_i32_0 : i32, i32
  }
  func.func @transform_4(%arg0: i32) -> (i32, i32) {
    %c0_i32 = arith.constant 0 : i32
    %c0_i32_0 = arith.constant 0 : i32
    %c0_i32_1 = arith.constant 0 : i32
    return %c0_i32, %c0_i32_0 : i32, i32
  }
  func.func @transform_5(%arg0: i32) -> (i32, i32, i32) {
    %c0_i32 = arith.constant 0 : i32
    %c0_i32_0 = arith.constant 0 : i32
    %c0_i32_1 = arith.constant 0 : i32
    return %arg0, %c0_i32, %c0_i32_0 : i32, i32, i32
  }
}

</mosaic_0001>

<bundles_post_ra>
// kernel: basic_block_forward.1
= control target key start
LH: loop header
LB: loop body
LE: loop exit
PB: predicated region body
PF: predicated region fallthrough
CT: control target
= control target key end

     0   :  { %v1841_v1 = vmov 0.0   ;;  %v1842_v7 = vmov 0   ;;  %s1843_s22 = smov 16   ;;  %s1844_s23 = smov 17   ;;  %v41_v48 = vlaneseq  ;;  %vm127_vm0 = vcmask 1043456   ;;  %s2242_s0 = inlined_call_operand.vmem [shape: f32[2,4,256], index: 0, kind: input, shape index: {}]   ;;  %s2243_s2 = inlined_call_operand.vmem [shape: f32[4,1], index: 2, kind: input, shape index: {}]   ;;  %s2244_s1 = inlined_call_operand.vmem [shape: bf16[4,72], index: 1, kind: input, shape index: {}]   ;;  %s2245_s4 = inlined_call_operand.vmem [shape: f32[4,1], index: 4, kind: input, shape index: {}]   ;;  %s2246_s3 = inlined_call_operand.vmem [shape: bf16[4,72], index: 3, kind: input, shape index: {}]   ;;  %s2247_s5 = inlined_call_operand.vmem [shape: f32[2,4,256], index: 5, kind: output, shape index: {}]  }
   0x1   :  { %v72_v0 = vld [vmem:[%s2242_s0] sm:$0xff]  ;;  %21 = vst [vmem:[#allocation2] sm:$0xf] %v1841_v1  ;;  %22 = vst [vmem:[#allocation2 + $0xc] sm:$0xf] %v1841_v1  ;;  %v1887_v2 = vld [vmem:[%s2242_s0 + $0x8] sm:$0xff]  ;;  %700 = vmatprep.mubr.bf16.mxu0 %v1842_v7  ;;  %741 = vmatprep.mubr.bf16.mxu1 %v1842_v7 }
   0x2   :  { %73 = vst [vmem:[#allocation2 + $0x4] sm:$0xff] %v72_v0  ;;  %v208_v3 = vcombine.high %v72_v0, %v72_v0  ;;  %v1891_v4 = vcombine.high %v1887_v2, %v1887_v2  ;;  %25 = vst [vmem:[#allocation3 + $0x10] sm:$0xff] %v1842_v7  ;;  %1683 = vset.pattern.permute.xlu1 %v1842_v7  ;;  %1774 = vset.pattern.permute.xlu0 %v1842_v7  ;;  %s1845_s24 = smov 15   ;;  %s1846_s25 = smov 1   ;;  %v555_v47 = vld [vmem:[%s2243_s2] sm:$0xf] }
   0x3   :  { %23 = vst [vmem:[#allocation3] sm:$0xff] %v1842_v7  ;;  %24 = vst [vmem:[#allocation3 + $0x8] sm:$0xff] %v1842_v7  ;;  %s1847_s26 = smov 127   ;;  %s1848_s27 = smov 113   ;;  %v42_v50 = vand.u32 127, %v41_v48  ;;  %vm129_vm1 = vcmask 130048  }
   0x4   :  { %v1893_v5 = vpack.c.bf16 %v208_v3, %v72_v0  ;;  %v1897_v6 = vpack.c.bf16 %v1891_v4, %v1887_v2  ;;  %26 = vst [vmem:[#allocation3 + $0x18] sm:$0xff] %v1842_v7  ;;  %27 = vst [vmem:[#allocation3 + $0x20] sm:$0xff] %v1842_v7  ;;  %v1613_v21 = vpack.i.bf16 %v208_v3, %v72_v0  ;;  %s1849_s28 = smov 112   ;;  %s1850_s29 = smov 111   ;;  %vm148_vm2 = vcmask 121856  }
   0x5   :  { %28 = vst [vmem:[#allocation3 + $0x28] sm:$0xff] %v1842_v7  ;;  %29 = vst [vmem:[#allocation3 + $0x30] sm:$0xff] %v1842_v7  ;;  %v1678_v44 = vpack.i.bf16 %v1891_v4, %v1887_v2  ;;  %v43_v51 = vadd.s32 128, %v42_v50  ;;  %v48_v59 = vand.u32 15, %v42_v50  ;;  %vm175_vm5 = vcmask 7168  }
   0x6   :  { %30 = vst [vmem:[#allocation3 + $0x38] sm:$0xff] %v1842_v7  ;;  %31 = vst [vmem:[#allocation3 + $0x40] sm:$0xff] %v1842_v7  ;;  %vm215_vm8 = vcmask 1039360   ;;  %vm89_vm9 = vcmask 138240   ;;  %vm242_vm10 = vcmask 924672   ;;  %vm281_vm11 = vcmask 916480  }
   0x7   :  { %32 = vst [vmem:[#allocation3 + $0x48] sm:$0xff] %v1842_v7  ;;  %33 = vst [vmem:[#allocation3 + $0x50] sm:$0xff] %v1842_v7  ;;  %v55_v56 = vand.u32 15, %v43_v51  ;;  %vm1966_vm3 = vcmp.lt.s32.totalorder %v48_v59, 15  ;;  %vm1989_vm7 = vcmp.gt.s32.totalorder %v48_v59, 0  ;;  %vm296_vm12 = vcmask 908288  }
   0x8   :  { %34 = vst [vmem:[#allocation3 + $0x58] sm:$0xff] %v1842_v7  ;;  %35 = vst [vmem:[#allocation3 + $0x60] sm:$0xff] %v1842_v7  ;;  %v205_v20 = vld [vmem:[#allocation2 + $0xc] sm:$0xf]  ;;  %vm651_vm13 = vcmask 588800  }
   0x9   :  { %36 = vst [vmem:[#allocation3 + $0x68] sm:$0xff] %v1842_v7  ;;  %37 = vst [vmem:[#allocation3 + $0x70] sm:$0xff] %v1842_v7  ;;  %v106_v8 = vld [vmem:[#allocation2 + $0x8] sm:$0xf]  ;;  %v74_v12 = vld [vmem:[#allocation2] sm:$0xff]  ;;  %v1633_v22 = vpack.i.bf16 %v1887_v2, %v205_v20  ;;  %vm1971_vm4 = vcmp.lt.s32.totalorder %v55_v56, 15 }
   0xa   :  { %38 = vst [vmem:[#allocation3 + $0x78] sm:$0xff] %v1842_v7  ;;  %39 = vst [vmem:[#allocation3 + $0x80] sm:$0xff] %v1842_v7  ;;  %v165_v9 = vld [vmem:[#allocation2 + $0x8] sm:$0xf]  ;;  %v1546_v11 = vpack.c.bf16 %v106_v8, %v106_v8  ;;  %v82_v14 = vcombine.high %v74_v12, %v74_v12  ;;  %v232_v30 = vld [vmem:[#allocation2 + $0xc] sm:$0xf] }
   0xb   :  { %40 = vst [vmem:[#allocation3 + $0x88] sm:$0xff] %v1842_v7  ;;  %203 = vst [vmem:[#allocation3 + $0x40] sm:$0x33] %v1893_v5  ;;  %v75_v10 = vld [vmem:[#allocation2 + $0x8] sm:$0xf]  ;;  %v1648_v32 = vpack.i.bf16 %v1887_v2, %v232_v30  ;;  %vm1984_vm6 = vcmp.gt.s32.totalorder %v55_v56, 0 }
   0xc   :  { %431 = vst [vmem:[#allocation3 + $0x48] sm:$0x33] %v1897_v6  ;;  %v134_v13 = vld [vmem:[#allocation2 + $0x8] sm:$0xf]  ;;  %123 = vrot.lane.b32.xlu1 %v1546_v11, %s1843_s22  ;;  %v1598_v15 = vpack.i.bf16 %v82_v14, %v74_v12  ;;  %v1545_v16 = vpack.c.bf16 %v82_v14, %v74_v12  ;;  %v259_v33 = vld [vmem:[#allocation2 + $0xc] sm:$0xf] }
   0xd   :  { %314 = vst [vmem:[#allocation2 + $0x4] sm:$0xff] %v1887_v2  ;;  %v1553_v35 = vpack.c.bf16 %v259_v33, %v259_v33  ;;  %v433_v37 = vld [vmem:[#allocation2 + $0xc] sm:$0xf] }
   0xe   :  { %1599 = vrot.lane.b32.xlu0 %v1598_v15, %s1844_s23  ;;  %v1668_v39 = vpack.i.bf16 %v433_v37, %v1891_v4  ;;  %v286_v40 = vld [vmem:[#allocation2 + $0xc] sm:$0xf] }
   0xf   :  { %v459_v41 = vld [vmem:[#allocation2 + $0xc] sm:$0xf] }
  0x10   :  { %121 = vrot.lane.b32.xlu1 %v1545_v16, %s1843_s22  ;;  %v1673_v42 = vpack.i.bf16 %v459_v41, %v1891_v4  ;;  %v485_v43 = vld [vmem:[#allocation2 + $0xc] sm:$0xf] }
  0x11   :  { %v1564_v45 = vpack.c.bf16 %v485_v43, %v485_v43  ;;  %v511_v46 = vld [vmem:[#allocation2 + $0xc] sm:$0xf] }
  0x12   :  { %1604 = vrot.lane.b32.xlu0 %v1598_v15, %s1845_s24 }
  0x14   :  { %v367_v17 = vld [vmem:[#allocation2] sm:$0xff]  ;;  %v316_v25 = vld [vmem:[#allocation2 + $0x8] sm:$0xf] }
  0x15   :  { %v1623_v18 = vpack.i.bf16 %v367_v17, %v134_v13  ;;  %v1628_v19 = vpack.i.bf16 %v367_v17, %v165_v9  ;;  %v344_v23 = vcombine.high %v367_v17, %v367_v17  ;;  %v1618_v24 = vpack.i.bf16 %v367_v17, %v75_v10  ;;  %v342_v28 = vld [vmem:[#allocation2 + $0x8] sm:$0xf] }
  0x16   :  { %1609 = vrot.lane.b32.xlu0 %v1598_v15, %s1846_s25  ;;  %v1557_v29 = vpack.c.bf16 %v342_v28, %v342_v28  ;;  %v368_v31 = vld [vmem:[#allocation2 + $0x8] sm:$0xf] }
  0x17   :  { %1624 = vrot.lane.b32.xlu1 %v1623_v18, %s1845_s24  ;;  %v1556_v26 = vpack.c.bf16 %v344_v23, %v367_v17  ;;  %v1638_v27 = vpack.i.bf16 %v316_v25, %v344_v23  ;;  %v1653_v34 = vpack.i.bf16 %v368_v31, %v344_v23  ;;  %v394_v36 = vld [vmem:[#allocation2 + $0x8] sm:$0xf] }
  0x18   :  { %v1658_v38 = vpack.i.bf16 %v394_v36, %v344_v23 }
  0x1a   :  { %1614 = vrot.lane.b32.xlu0 %v1613_v21, %s1847_s26 }
  0x1b   :  { %1629 = vrot.lane.b32.xlu1 %v1628_v19, %s1846_s25 }
  0x1e   :  { %1619 = vrot.lane.b32.xlu0 %v1618_v24, %s1844_s23 }
  0x1f   :  { %1634 = vrot.lane.b32.xlu1 %v1633_v22, %s1847_s26 }
  0x22   :  { %1639 = vrot.lane.b32.xlu0 %v1638_v27, %s1844_s23 }
  0x23   :  { %357 = vrot.lane.b32.xlu1 %v1556_v26, %s1843_s22 }
  0x26   :  { %359 = vrot.lane.b32.xlu0 %v1557_v29, %s1843_s22 }
  0x27   :  { %1644 = vrot.lane.b32.xlu1 %v1613_v21, %s1848_s27 }
  0x2a   :  { %1649 = vrot.lane.b32.xlu0 %v1648_v32, %s1848_s27 }
  0x2b   :  { %274 = vrot.lane.b32.xlu1 %v1893_v5, %s1849_s28 }
  0x2e   :  { %276 = vrot.lane.b32.xlu0 %v1553_v35, %s1849_s28 }
  0x2f   :  { %1654 = vrot.lane.b32.xlu1 %v1653_v34, %s1845_s24 }
  0x32   :  { %1659 = vrot.lane.b32.xlu0 %v1658_v38, %s1846_s25 }
  0x33   :  { %1664 = vrot.lane.b32.xlu1 %v1613_v21, %s1850_s29 }
  0x36   :  { %294 = vrot.lane.b32.xlu0 %v286_v40, %s1850_s29 }
  0x37   :  { %1669 = vrot.lane.b32.xlu1 %v1668_v39, %s1847_s26 }
  0x3a   :  { %1674 = vrot.lane.b32.xlu0 %v1673_v42, %s1848_s27 }
  0x3b   :  { %500 = vrot.lane.b32.xlu1 %v1897_v6, %s1849_s28 }
  0x3e   :  { %502 = vrot.lane.b32.xlu0 %v1564_v45, %s1849_s28 }
  0x3f   :  { %1679 = vrot.lane.b32.xlu1 %v1678_v44, %s1850_s29 }
  0x42   :  { %519 = vrot.lane.b32.xlu0 %v511_v46, %s1850_s29 }
  0x43   :  { %558 = vperm.xlu1 %1683, %v555_v47  }
  0x7e   :  { %v124_v49 = vpop.permute.xlu1 %123 }
  0x7f   :  { %v126_v52 = vrot.slane %v124_v49, 4 }
  0x80   :  { %v1600_v53 = vpop.permute.xlu0 %1599 }
  0x81   :  { %v1602_v17 = vunpack.i.h.bf16 %v1600_v53  ;;  %v1601_v19 = vunpack.i.l.bf16 %v1600_v53 }
  0x82   :  { %v122_v54 = vpop.permute.xlu1 %121 }
  0x83   :  { %v125_v55 = vrot.slane %v122_v54, 4  ;;  %v90_v30 = vsel %vm89_vm9, %v1601_v19, %v1602_v17 }
  0x84   :  { %v1605_v58 = vpop.permute.xlu0 %1604  ;;  %v94_v38 = vsel %vm1989_vm7, %v90_v30, 0.0 }
  0x85   :  { %v128_v57 = vsel %vm127_vm0, %v125_v55, %v126_v52  ;;  %v1607_v61 = vunpack.i.h.bf16 %v1605_v58  ;;  %v1606_v62 = vunpack.i.l.bf16 %v1605_v58 }
  0x86   :  { %v130_v60 = vsel %vm129_vm1, %v122_v54, %v128_v57 }
  0x87   :  { %132 = vst [vmem:[#allocation3 + $0x10] sm:$0x33] %v130_v60  ;;  %v149_v1 = vsel %vm148_vm2, %v1606_v62, %v1607_v61 }
  0x88   :  { %v1610_v4 = vpop.permute.xlu0 %1609  ;;  %v153_v9 = vsel %vm1966_vm3, %v149_v1, 0.0 }
  0x89   :  { %v1964_v63 = vpop.permute.xlu1 %1624  ;;  %v1612_v6 = vunpack.i.h.bf16 %v1610_v4  ;;  %v1611_v8 = vunpack.i.l.bf16 %v1610_v4 }
  0x8a   :  { %v1626_v3 = vunpack.i.l.bf16 %v1964_v63  ;;  %v1627_v4 = vunpack.i.h.bf16 %v1964_v63 }
  0x8b   :  { %v176_v13 = vsel %vm175_vm5, %v1611_v8, %v1612_v6 }
  0x8c   :  { %v150_v5 = vsel %vm148_vm2, %v1607_v61, %v1626_v3  ;;  %v1615_v18 = vpop.permute.xlu0 %1614  ;;  %v180_v23 = vsel %vm1989_vm7, %v176_v13, 0.0 }
  0x8d   :  { %v154_v10 = vsel %vm1971_vm4, %v150_v5, 0.0  ;;  %v1981_v11 = vpop.permute.xlu1 %1629  ;;  %v1617_v21 = vunpack.i.h.bf16 %v1615_v18  ;;  %v1616_v22 = vunpack.i.l.bf16 %v1615_v18 }
  0x8e   :  { %v1547_v12 = vpack.c.bf16 %v154_v10, %v153_v9  ;;  %v1631_v15 = vunpack.i.l.bf16 %v1981_v11 }
  0x8f   :  { %v216_v27 = vsel %vm215_vm8, %v1616_v22, %v1617_v21 }
  0x90   :  { %163 = vst [vmem:[#allocation3 + $0x20] sm:$0x33] %v1547_v12  ;;  %v177_v20 = vsel %vm175_vm5, %v1612_v6, %v1631_v15  ;;  %v1620_v29 = vpop.permute.xlu0 %1619  ;;  %v220_v33 = vsel %vm1966_vm3, %v216_v27, 0.0 }
  0x91   :  { %v181_v24 = vsel %vm1984_vm6, %v177_v20, 0.0  ;;  %v1998_v25 = vpop.permute.xlu1 %1634  ;;  %v1621_v32 = vunpack.i.l.bf16 %v1620_v29  ;;  %v1622_v41 = vunpack.i.h.bf16 %v1620_v29 }
  0x92   :  { %v1548_v26 = vpack.c.bf16 %v181_v24, %v180_v23  ;;  %v1636_v28 = vunpack.i.l.bf16 %v1998_v25 }
  0x93   :  { %v91_v37 = vsel %vm89_vm9, %v1602_v17, %v1621_v32 }
  0x94   :  { %190 = vst [vmem:[#allocation3 + $0x30] sm:$0x33] %v1548_v26  ;;  %v217_v31 = vsel %vm215_vm8, %v1617_v21, %v1636_v28  ;;  %v95_v39 = vsel %vm1984_vm6, %v91_v37, 0.0  ;;  %v1640_v40 = vpop.permute.xlu0 %1639 }
  0x95   :  { %v221_v34 = vsel %vm1971_vm4, %v217_v31, 0.0  ;;  %v358_v35 = vpop.permute.xlu1 %357  ;;  %v1544_v42 = vpack.c.bf16 %v95_v39, %v94_v38  ;;  %v1642_v43 = vunpack.i.h.bf16 %v1640_v40  ;;  %v1641_v44 = vunpack.i.l.bf16 %v1640_v40 }
  0x96   :  { %v1550_v36 = vpack.c.bf16 %v221_v34, %v220_v33  ;;  %v361_v48 = vrot.slane %v358_v35, 4  ;;  %v1632_v34 = vunpack.i.h.bf16 %v1981_v11  ;;  %v1637_v38 = vunpack.i.h.bf16 %v1998_v25 }
  0x97   :  { %104 = vst [vmem:[#allocation3] sm:$0x33] %v1544_v42  ;;  %v326_v46 = vsel %vm89_vm9, %v1622_v41, %v1641_v44  ;;  %v327_v47 = vsel %vm89_vm9, %v1641_v44, %v1642_v43 }
  0x98   :  { %230 = vst [vmem:[#allocation3 + $0x50] sm:$0x33] %v1550_v36  ;;  %v330_v49 = vsel %vm1989_vm7, %v326_v46, 0.0  ;;  %v331_v50 = vsel %vm1984_vm6, %v327_v47, 0.0  ;;  %v360_v51 = vpop.permute.xlu0 %359 }
  0x99   :  { %v1645_v45 = vpop.permute.xlu1 %1644  ;;  %v1555_v52 = vpack.c.bf16 %v331_v50, %v330_v49  ;;  %v362_v55 = vrot.slane %v360_v51, 4 }
  0x9a   :  { %v1647_v53 = vunpack.i.h.bf16 %v1645_v45  ;;  %v1646_v54 = vunpack.i.l.bf16 %v1645_v45 }
  0x9b   :  { %340 = vst [vmem:[#allocation3 + $0x8] sm:$0x33] %v1555_v52  ;;  %v363_v57 = vsel %vm127_vm0, %v361_v48, %v362_v55  ;;  %v1782_v15 = vld [vmem:[#allocation3 + $0x24] ss:$16 sps:$4 sm:$0xff]   ;;  %v1784_v28 = vld [vmem:[#allocation3 + $0x20] ss:$16 sps:$4 sm:$0xff]  }
  0x9c   :  { %v364_v58 = vsel %vm129_vm1, %v358_v35, %v363_v57  ;;  %v2021_v59 = vpop.permute.xlu0 %1649  ;;  %v243_v60 = vsel %vm242_vm10, %v1646_v54, %v1647_v53 }
  0x9d   :  { %v275_v56 = vpop.permute.xlu1 %274  ;;  %366 = vst [vmem:[#allocation3 + $0x18] sm:$0x33] %v364_v58  ;;  %v1651_v61 = vunpack.i.l.bf16 %v2021_v59  ;;  %v247_v9 = vsel %vm1989_vm7, %v243_v60, 0.0 }
  0x9e   :  { %v1779_v1 = vld [vmem:[#allocation3 + $0x4] ss:$16 sps:$4 sm:$0xff]   ;;  %v1781_v3 = vld [vmem:[#allocation3] ss:$16 sps:$4 sm:$0xff]   ;;  %v278_v10 = vrot.slane %v275_v56, 4 }
  0x9f   :  { %v244_v5 = vsel %vm242_vm10, %v1647_v53, %v1651_v61  ;;  %668 = vmatprep.subr.bf16.mxu0 %v1779_v1  ;;  %v1785_v29 = vld [vmem:[#allocation3 + $0x44] ss:$16 sps:$4 sm:$0xff]   ;;  %v1790_v11 = vld [vmem:[#allocation3 + $0x40] ss:$16 sps:$4 sm:$0xff]   ;;  %v1652_v61 = vunpack.i.h.bf16 %v2021_v59 }
  0xa0   :  { %v248_v12 = vsel %vm1984_vm6, %v244_v5, 0.0  ;;  %v277_v13 = vpop.permute.xlu0 %276  ;;  %669 = vmatpush1.bf16.msra.mxu0 %v1781_v3 }
  0xa1   :  { %v1655_v62 = vpop.permute.xlu1 %1654  ;;  %v1551_v17 = vpack.c.bf16 %v248_v12, %v247_v9  ;;  %v279_v19 = vrot.slane %v277_v13, 4  ;;  %670 = vmatprep.subr.bf16.mxu0 %v1782_v15 }
  0xa2   :  { %v1657_v6 = vunpack.i.h.bf16 %v1655_v62  ;;  %v1656_v8 = vunpack.i.l.bf16 %v1655_v62 }
  0xa3   :  { %257 = vst [vmem:[#allocation3 + $0x60] sm:$0x33] %v1551_v17  ;;  %v280_v24 = vsel %vm127_vm0, %v278_v10, %v279_v19 }
  0xa4   :  { %v378_v18 = vsel %vm148_vm2, %v1627_v4, %v1656_v8  ;;  %v379_v63 = vsel %vm148_vm2, %v1656_v8, %v1657_v6  ;;  %v282_v30 = vsel %vm281_vm11, %v275_v56, %v280_v24  ;;  %v1660_v31 = vpop.permute.xlu0 %1659  ;;  %v1787_v32 = vld [vmem:[#allocation3 + $0xc] ss:$16 sps:$4 sm:$0xff]   ;;  %v1789_v33 = vld [vmem:[#allocation3 + $0x8] ss:$16 sps:$4 sm:$0xff]   ;;  %671 = vmatpush1.bf16.msra.mxu0 %v1784_v28 }
  0xa5   :  { %v382_v20 = vsel %vm1966_vm3, %v378_v18, 0.0  ;;  %v383_v21 = vsel %vm1971_vm4, %v379_v63, 0.0  ;;  %v1665_v22 = vpop.permute.xlu1 %1664  ;;  %284 = vst [vmem:[#allocation3 + $0x70] sm:$0x33] %v282_v30  ;;  %v1662_v35 = vunpack.i.h.bf16 %v1660_v31  ;;  %v1661_v36 = vunpack.i.l.bf16 %v1660_v31  ;;  %672 = vmatprep.subr.bf16.mxu0 %v1785_v29  ;;  %709 = vmatprep.subr.bf16.mxu1 %v1787_v32 }
  0xa6   :  { %v1558_v23 = vpack.c.bf16 %v383_v21, %v382_v20  ;;  %v1667_v26 = vunpack.i.h.bf16 %v1665_v22  ;;  %v1666_v27 = vunpack.i.l.bf16 %v1665_v22  ;;  %710 = vmatpush1.bf16.msra.mxu1 %v1789_v33  ;;  %v536_v33 = vld [vmem:[%s2244_s1] sm:$0x3] }
  0xa7   :  { %v404_v40 = vsel %vm175_vm5, %v1632_v34, %v1661_v36  ;;  %v405_v41 = vsel %vm175_vm5, %v1661_v36, %v1662_v35 }
  0xa8   :  { %392 = vst [vmem:[#allocation3 + $0x28] sm:$0x33] %v1558_v23  ;;  %v297_v37 = vsel %vm296_vm12, %v1666_v27, %v1667_v26  ;;  %v408_v44 = vsel %vm1989_vm7, %v404_v40, 0.0  ;;  %v409_v45 = vsel %vm1984_vm6, %v405_v41, 0.0  ;;  %v295_v46 = vpop.permute.xlu0 %294  ;;  %673 = vmatpush1.bf16.msra.mxu0 %v1790_v11 }
  0xa9   :  { %v1670_v39 = vpop.permute.xlu1 %1669  ;;  %v301_v25 = vsel %vm1966_vm3, %v297_v37, 0.0  ;;  %v1559_v47 = vpack.c.bf16 %v409_v45, %v408_v44  ;;  %v298_v50 = vsel %vm296_vm12, %v1667_v26, %v295_v46 }
  0xaa   :  { %v1672_v42 = vunpack.i.h.bf16 %v1670_v39  ;;  %v1671_v43 = vunpack.i.l.bf16 %v1670_v39  ;;  %v302_v53 = vsel %vm1971_vm4, %v298_v50, 0.0 }
  0xab   :  { %418 = vst [vmem:[#allocation3 + $0x38] sm:$0x33] %v1559_v47  ;;  %v1554_v56 = vpack.c.bf16 %v302_v53, %v301_v25 }
  0xac   :  { %v443_v48 = vsel %vm215_vm8, %v1637_v38, %v1671_v43  ;;  %v444_v49 = vsel %vm215_vm8, %v1671_v43, %v1672_v42  ;;  %v1675_v57 = vpop.permute.xlu0 %1674  ;;  %v1791_v58 = vld [vmem:[#allocation3 + $0x64] ss:$16 sps:$4 sm:$0xff]   ;;  %v1793_v60 = vld [vmem:[#allocation3 + $0x60] ss:$16 sps:$4 sm:$0xff]  }
  0xad   :  { %v447_v51 = vsel %vm1966_vm3, %v443_v48, 0.0  ;;  %v448_v52 = vsel %vm1971_vm4, %v444_v49, 0.0  ;;  %v501_v54 = vpop.permute.xlu1 %500  ;;  %311 = vst [vmem:[#allocation3 + $0x80] sm:$0x33] %v1554_v56  ;;  %v1677_v62 = vunpack.i.h.bf16 %v1675_v57  ;;  %v1676_v1 = vunpack.i.l.bf16 %v1675_v57  ;;  %674 = vmatprep.subr.bf16.mxu0 %v1791_v58 }
  0xae   :  { %v1561_v55 = vpack.c.bf16 %v448_v52, %v447_v51  ;;  %v504_v3 = vrot.slane %v501_v54, 4  ;;  %675 = vmatpush1.bf16.msra.mxu0 %v1793_v60 }
  0xaf   :  { %v469_v5 = vsel %vm242_vm10, %v1652_v61, %v1676_v1  ;;  %v470_v6 = vsel %vm242_vm10, %v1676_v1, %v1677_v62 }
  0xb0   :  { %457 = vst [vmem:[#allocation3 + $0x58] sm:$0x33] %v1561_v55  ;;  %v473_v10 = vsel %vm1989_vm7, %v469_v5, 0.0  ;;  %v474_v59 = vsel %vm1984_vm6, %v470_v6, 0.0  ;;  %v503_v12 = vpop.permute.xlu0 %502 }
  0xb1   :  { %v1680_v4 = vpop.permute.xlu1 %1679  ;;  %v1562_v13 = vpack.c.bf16 %v474_v59, %v473_v10  ;;  %v505_v15 = vrot.slane %v503_v12, 4 }
  0xb2   :  { %v1682_v8 = vunpack.i.h.bf16 %v1680_v4  ;;  %v1681_v9 = vunpack.i.l.bf16 %v1680_v4  ;;  %v1794_v18 = vld [vmem:[#allocation3 + $0x2c] ss:$16 sps:$4 sm:$0xff]   ;;  %v1796_v63 = vld [vmem:[#allocation3 + $0x28] ss:$16 sps:$4 sm:$0xff]  }
  0xb3   :  { %483 = vst [vmem:[#allocation3 + $0x68] sm:$0x33] %v1562_v13  ;;  %v506_v19 = vsel %vm127_vm0, %v504_v3, %v505_v15  ;;  %711 = vmatprep.subr.bf16.mxu1 %v1794_v18  ;;  %v903_v13 = vld [vmem:[#allocation2 + $0xc] sm:$0xf] }
  0xb4   :  { %v521_v17 = vsel %vm296_vm12, %v1681_v9, %v1682_v8  ;;  %v507_v20 = vsel %vm281_vm11, %v501_v54, %v506_v19  ;;  %v520_v22 = vpop.permute.xlu0 %519  ;;  %v553_v23 = vld [vmem:[#allocation3 + $0x80] sm:$0xff]  ;;  %712 = vmatpush1.bf16.msra.mxu1 %v1796_v63 }
  0xb5   :  { %v525_v21 = vsel %vm1966_vm3, %v521_v17, 0.0  ;;  %509 = vst [vmem:[#allocation3 + $0x78] sm:$0x33] %v507_v20  ;;  %v522_v26 = vsel %vm296_vm12, %v1682_v8, %v520_v22  ;;  %v1489_v27 = vcombine.high %v553_v23, %v553_v23  ;;  %v1488_v28 = vcombine.low %v553_v23, %v553_v23  ;;  %v877_v20 = vld [vmem:[#allocation2 + $0xc] sm:$0xf] }
  0xb6   :  { %v526_v29 = vsel %vm1971_vm4, %v522_v26, 0.0  ;;  %v1103_v22 = vld [vmem:[#allocation2 + $0xc] sm:$0xf] }
  0xb7   :  { %v1798_v24 = vld [vmem:[#allocation3 + $0x4c] ss:$16 sps:$4 sm:$0xff]   ;;  %v1565_v30 = vpack.c.bf16 %v526_v29, %v525_v21  ;;  %1492 = vmatprep.subr.msk.bf16.mxu0 %vm127_vm0, %v1489_v27  ;;  %v657_v31 = vsel %vm127_vm0, %v1488_v28, 0  ;;  %v1801_v32 = vld [vmem:[#allocation3 + $0x48] ss:$16 sps:$4 sm:$0xff]  }
  0xb8   :  { %713 = vmatprep.subr.bf16.mxu1 %v1798_v24  ;;  %677 = vmatpush1.bf16.msra.mxu0 %v657_v31  ;;  %v929_v29 = vld [vmem:[#allocation2 + $0xc] sm:$0xf] }
  0xb9   :  { %535 = vst [vmem:[#allocation3 + $0x88] sm:$0x33] %v1565_v30  ;;  %714 = vmatpush1.bf16.msra.mxu1 %v1801_v32  ;;  %v1575_v32 = vpack.c.bf16 %v929_v29, %v929_v29 }
  0xbb   :  { %1493 = vmatmul.mubr.msk.bf16.vlgmr.msra.gmra.mrb[0].mxu0 %vm651_vm13, %v536_v33 }
  0xbc   :  { %v1802_v34 = vld [vmem:[#allocation3 + $0x6c] ss:$16 sps:$4 sm:$0xff]   ;;  %v1804_v35 = vld [vmem:[#allocation3 + $0x68] ss:$16 sps:$4 sm:$0xff]   ;;  %1368 = vmatprep.mubr.bf16.mxu0 %v1842_v7 }
  0xbd   :  { %715 = vmatprep.subr.bf16.mxu1 %v1802_v34 }
  0xbe   :  { %716 = vmatpush1.bf16.msra.mxu1 %v1804_v35  ;;  %v1129_v35 = vld [vmem:[#allocation2 + $0xc] sm:$0xf] }
  0xc0   :  { %v554_v36 = vld [vmem:[#allocation3 + $0x88] sm:$0xff] }
  0xc1   :  { %v1491_v37 = vcombine.high %v554_v36, %v554_v36  ;;  %v1490_v38 = vcombine.low %v554_v36, %v554_v36  ;;  %v1155_v36 = vld [vmem:[#allocation2 + $0xc] sm:$0xf] }
  0xc2   :  { %v559_v40 = vpop.permute.xlu1 %558 }
  0xc3   :  { %1494 = vmatprep.subr.msk.bf16.mxu1 %vm127_vm0, %v1491_v37  ;;  %v663_v39 = vsel %vm127_vm0, %v1490_v38, 0  ;;  %v1586_v38 = vpack.c.bf16 %v1155_v36, %v1155_v36 }
  0xc4   :  { %718 = vmatpush1.bf16.msra.mxu1 %v663_v39  ;;  %v1181_v39 = vld [vmem:[#allocation2 + $0xc] sm:$0xf] }
  0xc7   :  { %1495 = vmatmul.mubr.msk.bf16.vlgmr.msra.gmra.mrb[0].mxu1 %vm651_vm13, %v536_v33 }
  0xc8   :  { %1409 = vmatprep.mubr.bf16.mxu1 %v1842_v7 }
 0x18e   :  { %v702_v41 = vpop.f32.mrb[0].mxu0 }
 0x18f   :  { %v703_v42 = vadd.f32 %v702_v41, %v559_v40  ;;  %v704_v43 = vpop.f32.mrb[1].mxu0 }
 0x190   :  { %v705_v11 = vadd.f32 %v704_v43, %v559_v40  ;;  %v706_v44 = vpop.f32.mrb[2].mxu0  ;;  %v1225_v43 = vld [vmem:[%s2245_s4] sm:$0xf] }
 0x191   :  { %v750_v45 = vmax.f32 %v703_v42, 0.0  ;;  %v707_v25 = vpop.f32.mrb[3].mxu0 }
 0x192   :  { %v751_v46 = vmax.f32 %v705_v11, 0.0 }
 0x194   :  { %v756_v47 = vcombine.low %v750_v45, %v751_v46  ;;  %v1839_v48 = vcombine.low %v751_v46, %v751_v46 }
 0x196   :  { %758 = vst [vmem:[#allocation2 + $0x4] sm:$0xff] %v756_v47  ;;  %v1574_v49 = vpack.c.bf16 %v1839_v48, %v756_v47  ;;  %v1704_v8 = vpack.i.bf16 %v1839_v48, %v756_v47 }
 0x198   :  { %875 = vst [vmem:[#allocation3 + $0x40] sm:$0x33] %v1574_v49 }
 0x19a   :  { %v743_v50 = vpop.f32.mrb[0].mxu1 }
 0x19b   :  { %v744_v51 = vadd.f32 %v743_v50, %v559_v40  ;;  %v745_v52 = vpop.f32.mrb[1].mxu1 }
 0x19c   :  { %v746_v53 = vadd.f32 %v745_v52, %v559_v40  ;;  %v747_v54 = vpop.f32.mrb[2].mxu1  ;;  %v955_v40 = vld [vmem:[#allocation2 + $0xc] sm:$0xf] }
 0x19d   :  { %v752_v7 = vmax.f32 %v744_v51, 0.0  ;;  %v748_v55 = vpop.f32.mrb[3].mxu1  ;;  %v786_v56 = vld [vmem:[#allocation2 + $0x8] sm:$0xf]  ;;  %v759_v57 = vld [vmem:[#allocation2] sm:$0xff] }
 0x19e   :  { %v753_v58 = vmax.f32 %v746_v53, 0.0  ;;  %v1568_v60 = vpack.c.bf16 %v786_v56, %v786_v56  ;;  %v763_v61 = vcombine.high %v759_v57, %v759_v57  ;;  %v760_v3 = vld [vmem:[#allocation2 + $0x8] sm:$0xf] }
 0x19f   :  { %v812_v4 = vld [vmem:[#allocation2 + $0x8] sm:$0xf] }
 0x1a0   :  { %v2085_v62 = vcombine.low %v752_v7, %v753_v58  ;;  %803 = vrot.lane.b32.xlu1 %v1568_v60, %s1843_s22  ;;  %v1684_v1 = vpack.i.bf16 %v763_v61, %v759_v57  ;;  %v838_v5 = vld [vmem:[#allocation2 + $0x8] sm:$0xf]  ;;  %v1840_v6 = vcombine.low %v753_v58, %v753_v58  ;;  %v1567_v10 = vpack.c.bf16 %v763_v61, %v759_v57 }
 0x1a2   :  { %1685 = vrot.lane.b32.xlu0 %v1684_v1, %s1844_s23  ;;  %984 = vst [vmem:[#allocation2 + $0x4] sm:$0xff] %v2085_v62  ;;  %v1585_v9 = vpack.c.bf16 %v1840_v6, %v2085_v62  ;;  %v1729_v17 = vpack.i.bf16 %v2085_v62, %v903_v13  ;;  %v1724_v23 = vpack.i.bf16 %v2085_v62, %v877_v20 }
 0x1a3   :  { %v1749_v24 = vpack.i.bf16 %v1103_v22, %v1840_v6  ;;  %v1754_v37 = vpack.i.bf16 %v1129_v35, %v1840_v6  ;;  %v1769_v41 = vpack.i.bf16 %v1181_v39, %v1840_v6  ;;  %v1764_v42 = vpack.i.bf16 %v2085_v62, %v955_v40 }
 0x1a4   :  { %1690 = vrot.lane.b32.xlu1 %v1684_v1, %s1845_s24  ;;  %1101 = vst [vmem:[#allocation3 + $0x48] sm:$0x33] %v1585_v9 }
 0x1a6   :  { %1705 = vrot.lane.b32.xlu0 %v1704_v8, %s1848_s27 }
 0x1a8   :  { %1695 = vrot.lane.b32.xlu1 %v1684_v1, %s1846_s25 }
 0x1a9   :  { %v985_v59 = vld [vmem:[#allocation2] sm:$0xff]  ;;  %v1038_v19 = vld [vmem:[#allocation2 + $0x8] sm:$0xf] }
 0x1aa   :  { %801 = vrot.lane.b32.xlu0 %v1567_v10, %s1843_s22  ;;  %v1709_v12 = vpack.i.bf16 %v985_v59, %v760_v3  ;;  %v1714_v15 = vpack.i.bf16 %v985_v59, %v812_v4  ;;  %v1041_v18 = vcombine.high %v985_v59, %v985_v59  ;;  %v1719_v63 = vpack.i.bf16 %v985_v59, %v838_v5  ;;  %v986_v26 = vld [vmem:[#allocation2 + $0x8] sm:$0xf] }
 0x1ab   :  { %v1012_v28 = vld [vmem:[#allocation2 + $0x8] sm:$0xf] }
 0x1ac   :  { %1700 = vrot.lane.b32.xlu1 %v1704_v8, %s1847_s26  ;;  %v1739_v21 = vpack.i.bf16 %v1038_v19, %v1041_v18  ;;  %v1734_v27 = vpack.i.bf16 %v986_v26, %v1041_v18  ;;  %v1578_v30 = vpack.c.bf16 %v1041_v18, %v985_v59  ;;  %v1579_v31 = vpack.c.bf16 %v1012_v28, %v1012_v28  ;;  %v1064_v33 = vld [vmem:[#allocation2 + $0x8] sm:$0xf] }
 0x1ad   :  { %v1744_v34 = vpack.i.bf16 %v1064_v33, %v1041_v18 }
 0x1ae   :  { %944 = vrot.lane.b32.xlu0 %v1574_v49, %s1849_s28 }
 0x1b0   :  { %1710 = vrot.lane.b32.xlu1 %v1709_v12, %s1844_s23 }
 0x1b2   :  { %1715 = vrot.lane.b32.xlu0 %v1714_v15, %s1845_s24 }
 0x1b4   :  { %1730 = vrot.lane.b32.xlu1 %v1729_v17, %s1848_s27 }
 0x1b6   :  { %1720 = vrot.lane.b32.xlu0 %v1719_v63, %s1846_s25 }
 0x1b8   :  { %1740 = vrot.lane.b32.xlu1 %v1739_v21, %s1845_s24 }
 0x1ba   :  { %1725 = vrot.lane.b32.xlu0 %v1724_v23, %s1847_s26 }
 0x1bc   :  { %1750 = vrot.lane.b32.xlu1 %v1749_v24, %s1847_s26 }
 0x1be   :  { %1735 = vrot.lane.b32.xlu0 %v1734_v27, %s1844_s23 }
 0x1c0   :  { %1027 = vrot.lane.b32.xlu1 %v1578_v30, %s1843_s22 }
 0x1c2   :  { %1029 = vrot.lane.b32.xlu0 %v1579_v31, %s1843_s22 }
 0x1c4   :  { %946 = vrot.lane.b32.xlu1 %v1575_v32, %s1849_s28 }
 0x1c6   :  { %1745 = vrot.lane.b32.xlu0 %v1744_v34, %s1846_s25 }
 0x1c8   :  { %1760 = vrot.lane.b32.xlu1 %v1704_v8, %s1850_s29 }
 0x1ca   :  { %1755 = vrot.lane.b32.xlu0 %v1754_v37, %s1848_s27 }
 0x1cc   :  { %1170 = vrot.lane.b32.xlu1 %v1585_v9, %s1849_s28 }
 0x1ce   :  { %1172 = vrot.lane.b32.xlu0 %v1586_v38, %s1849_s28 }
 0x1d0   :  { %1770 = vrot.lane.b32.xlu1 %v1769_v41, %s1850_s29 }
 0x1d2   :  { %1765 = vrot.lane.b32.xlu0 %v1764_v42, %s1850_s29 }
 0x1d6   :  { %1228 = vperm.xlu0 %1774, %v1225_v43  }
 0x212   :  { %v804_v11 = vpop.permute.xlu1 %803 }
 0x213   :  { %v806_v48 = vrot.slane %v804_v11, 4 }
 0x214   :  { %v1686_v44 = vpop.permute.xlu0 %1685 }
 0x215   :  { %v1688_v51 = vunpack.i.h.bf16 %v1686_v44  ;;  %v1687_v52 = vunpack.i.l.bf16 %v1686_v44 }
 0x216   :  { %v1691_v45 = vpop.permute.xlu1 %1690 }
 0x217   :  { %v1693_v55 = vunpack.i.h.bf16 %v1691_v45  ;;  %v1692_v56 = vunpack.i.l.bf16 %v1691_v45  ;;  %v770_v58 = vsel %vm89_vm9, %v1687_v52, %v1688_v51 }
 0x218   :  { %v1706_v25 = vpop.permute.xlu0 %1705  ;;  %v774_v9 = vsel %vm1989_vm7, %v770_v58, 0.0 }
 0x219   :  { %v1708_v60 = vunpack.i.h.bf16 %v1706_v25  ;;  %v1707_v61 = vunpack.i.l.bf16 %v1706_v25  ;;  %v822_v5 = vsel %vm148_vm2, %v1692_v56, %v1693_v55 }
 0x21a   :  { %v1696_v46 = vpop.permute.xlu1 %1695  ;;  %v826_v18 = vsel %vm1966_vm3, %v822_v5, 0.0 }
 0x21b   :  { %v1698_v1 = vunpack.i.h.bf16 %v1696_v46  ;;  %v1697_v3 = vunpack.i.l.bf16 %v1696_v46  ;;  %v913_v12 = vsel %vm242_vm10, %v1707_v61, %v1708_v60 }
 0x21c   :  { %v802_v47 = vpop.permute.xlu0 %801  ;;  %v917_v27 = vsel %vm1989_vm7, %v913_v12, 0.0 }
 0x21d   :  { %v805_v49 = vrot.slane %v802_v47, 4  ;;  %v848_v63 = vsel %vm175_vm5, %v1697_v3, %v1698_v1 }
 0x21e   :  { %v2121_v50 = vpop.permute.xlu1 %1700  ;;  %v852_v35 = vsel %vm1989_vm7, %v848_v63, 0.0 }
 0x21f   :  { %v807_v53 = vsel %vm127_vm0, %v805_v49, %v806_v48  ;;  %v1703_v19 = vunpack.i.h.bf16 %v2121_v50  ;;  %v1702_v22 = vunpack.i.l.bf16 %v2121_v50 }
 0x220   :  { %v808_v54 = vsel %vm129_vm1, %v802_v47, %v807_v53  ;;  %v2125_v7 = vpop.permute.xlu0 %944 }
 0x221   :  { %810 = vst [vmem:[#allocation3 + $0x10] sm:$0x33] %v808_v54  ;;  %v887_v38 = vsel %vm215_vm8, %v1702_v22, %v1703_v19  ;;  %v948_v63 = vrot.slane %v2125_v7, 4 }
 0x222   :  { %v2127_v57 = vpop.permute.xlu1 %1710  ;;  %v891_v48 = vsel %vm1966_vm3, %v887_v38, 0.0 }
 0x223   :  { %v1712_v62 = vunpack.i.l.bf16 %v2127_v57  ;;  %v1713_v49 = vunpack.i.h.bf16 %v2127_v57 }
 0x224   :  { %v1716_v4 = vpop.permute.xlu0 %1715 }
 0x225   :  { %v771_v6 = vsel %vm89_vm9, %v1688_v51, %v1712_v62  ;;  %v1717_v8 = vunpack.i.l.bf16 %v1716_v4  ;;  %v1718_v28 = vunpack.i.h.bf16 %v1716_v4 }
 0x226   :  { %v775_v10 = vsel %vm1984_vm6, %v771_v6, 0.0  ;;  %v2137_v59 = vpop.permute.xlu1 %1730 }
 0x227   :  { %v1566_v13 = vpack.c.bf16 %v775_v10, %v774_v9  ;;  %v823_v15 = vsel %vm148_vm2, %v1693_v55, %v1717_v8  ;;  %v1732_v17 = vunpack.i.l.bf16 %v2137_v59 }
 0x228   :  { %v827_v20 = vsel %vm1971_vm4, %v823_v15, 0.0  ;;  %v2148_v21 = vpop.permute.xlu0 %1720 }
 0x229   :  { %784 = vst [vmem:[#allocation3] sm:$0x33] %v1566_v13  ;;  %v1569_v23 = vpack.c.bf16 %v827_v20, %v826_v18  ;;  %v914_v24 = vsel %vm242_vm10, %v1708_v60, %v1732_v17  ;;  %v1722_v26 = vunpack.i.l.bf16 %v2148_v21 }
 0x22a   :  { %v918_v29 = vsel %vm1984_vm6, %v914_v24, 0.0  ;;  %v1741_v30 = vpop.permute.xlu1 %1740  ;;  %v1723_v24 = vunpack.i.h.bf16 %v2148_v21 }
 0x22b   :  { %836 = vst [vmem:[#allocation3 + $0x20] sm:$0x33] %v1569_v23  ;;  %v1573_v31 = vpack.c.bf16 %v918_v29, %v917_v27  ;;  %v849_v32 = vsel %vm175_vm5, %v1698_v1, %v1722_v26  ;;  %v1743_v33 = vunpack.i.h.bf16 %v1741_v30  ;;  %v1742_v34 = vunpack.i.l.bf16 %v1741_v30 }
 0x22c   :  { %v853_v36 = vsel %vm1984_vm6, %v849_v32, 0.0  ;;  %v1726_v37 = vpop.permute.xlu0 %1725 }
 0x22d   :  { %927 = vst [vmem:[#allocation3 + $0x60] sm:$0x33] %v1573_v31  ;;  %v1570_v39 = vpack.c.bf16 %v853_v36, %v852_v35  ;;  %v1048_v40 = vsel %vm148_vm2, %v1718_v28, %v1742_v34  ;;  %v1049_v41 = vsel %vm148_vm2, %v1742_v34, %v1743_v33  ;;  %v1727_v11 = vunpack.i.l.bf16 %v1726_v37 }
 0x22e   :  { %v1052_v42 = vsel %vm1966_vm3, %v1048_v40, 0.0  ;;  %v1053_v43 = vsel %vm1971_vm4, %v1049_v41, 0.0  ;;  %v1751_v44 = vpop.permute.xlu1 %1750  ;;  %v1728_v25 = vunpack.i.h.bf16 %v1726_v37  ;;  %v1733_v37 = vunpack.i.h.bf16 %v2137_v59 }
 0x22f   :  { %862 = vst [vmem:[#allocation3 + $0x30] sm:$0x33] %v1570_v39  ;;  %v1580_v45 = vpack.c.bf16 %v1053_v43, %v1052_v42  ;;  %v1753_v46 = vunpack.i.h.bf16 %v1751_v44  ;;  %v1752_v47 = vunpack.i.l.bf16 %v1751_v44  ;;  %v888_v50 = vsel %vm215_vm8, %v1703_v19, %v1727_v11 }
 0x230   :  { %v1736_v51 = vpop.permute.xlu0 %1735  ;;  %v1809_v52 = vld [vmem:[#allocation3] ss:$16 sps:$4 sm:$0xff]   ;;  %v1811_v53 = vld [vmem:[#allocation3 + $0x4] ss:$16 sps:$4 sm:$0xff]   ;;  %v892_v54 = vsel %vm1971_vm4, %v888_v50, 0.0 }
 0x231   :  { %1062 = vst [vmem:[#allocation3 + $0x28] sm:$0x33] %v1580_v45  ;;  %v1113_v55 = vsel %vm215_vm8, %v1728_v25, %v1752_v47  ;;  %v1114_v56 = vsel %vm215_vm8, %v1752_v47, %v1753_v46  ;;  %v1738_v58 = vunpack.i.h.bf16 %v1736_v51  ;;  %v1572_v60 = vpack.c.bf16 %v892_v54, %v891_v48  ;;  %1336 = vmatprep.subr.bf16.mxu0 %v1811_v53 }
 0x232   :  { %v1117_v61 = vsel %vm1966_vm3, %v1113_v55, 0.0  ;;  %v1118_v57 = vsel %vm1971_vm4, %v1114_v56, 0.0  ;;  %v1737_v62 = vunpack.i.l.bf16 %v1736_v51  ;;  %v1028_v1 = vpop.permute.xlu1 %1027  ;;  %1337 = vmatpush1.bf16.msra.mxu0 %v1809_v52 }
 0x233   :  { %v1583_v3 = vpack.c.bf16 %v1118_v57, %v1117_v61  ;;  %901 = vst [vmem:[#allocation3 + $0x50] sm:$0x33] %v1572_v60  ;;  %v1031_v10 = vrot.slane %v1028_v1, 4 }
 0x234   :  { %v996_v4 = vsel %vm89_vm9, %v1713_v49, %v1737_v62  ;;  %v997_v5 = vsel %vm89_vm9, %v1737_v62, %v1738_v58  ;;  %v1030_v6 = vpop.permute.xlu0 %1029 }
 0x235   :  { %1127 = vst [vmem:[#allocation3 + $0x58] sm:$0x33] %v1583_v3  ;;  %v1000_v8 = vsel %vm1989_vm7, %v996_v4, 0.0  ;;  %v1001_v9 = vsel %vm1984_vm6, %v997_v5, 0.0  ;;  %v1032_v12 = vrot.slane %v1030_v6, 4 }
 0x236   :  { %v1577_v13 = vpack.c.bf16 %v1001_v9, %v1000_v8  ;;  %v947_v15 = vpop.permute.xlu1 %946  ;;  %v1812_v17 = vld [vmem:[#allocation3 + $0x20] ss:$16 sps:$4 sm:$0xff]   ;;  %v1814_v18 = vld [vmem:[#allocation3 + $0x24] ss:$16 sps:$4 sm:$0xff]  }
 0x237   :  { %v1033_v19 = vsel %vm127_vm0, %v1031_v10, %v1032_v12  ;;  %v949_v20 = vrot.slane %v947_v15, 4  ;;  %1338 = vmatprep.subr.bf16.mxu0 %v1814_v18 }
 0x238   :  { %1010 = vst [vmem:[#allocation3 + $0x8] sm:$0x33] %v1577_v13  ;;  %v1034_v22 = vsel %vm129_vm1, %v1028_v1, %v1033_v19  ;;  %v1746_v23 = vpop.permute.xlu0 %1745  ;;  %1339 = vmatpush1.bf16.msra.mxu0 %v1812_v17 }
 0x239   :  { %1036 = vst [vmem:[#allocation3 + $0x18] sm:$0x33] %v1034_v22  ;;  %v950_v26 = vsel %vm127_vm0, %v948_v63, %v949_v20  ;;  %v1748_v27 = vunpack.i.h.bf16 %v1746_v23  ;;  %v1747_v28 = vunpack.i.l.bf16 %v1746_v23 }
 0x23a   :  { %v951_v29 = vsel %vm281_vm11, %v2125_v7, %v950_v26  ;;  %v1761_v30 = vpop.permute.xlu1 %1760  ;;  %v1815_v33 = vld [vmem:[#allocation3 + $0x40] ss:$16 sps:$4 sm:$0xff]   ;;  %v1817_v34 = vld [vmem:[#allocation3 + $0x44] ss:$16 sps:$4 sm:$0xff]  }
 0x23b   :  { %953 = vst [vmem:[#allocation3 + $0x70] sm:$0x33] %v951_v29  ;;  %v1074_v31 = vsel %vm175_vm5, %v1723_v24, %v1747_v28  ;;  %v1075_v32 = vsel %vm175_vm5, %v1747_v28, %v1748_v27  ;;  %1340 = vmatprep.subr.bf16.mxu0 %v1817_v34  ;;  %v1763_v43 = vunpack.i.h.bf16 %v1761_v30  ;;  %v1762_v25 = vunpack.i.l.bf16 %v1761_v30  ;;  %v1206_v24 = vld [vmem:[%s2246_s3] sm:$0x3]  ;;  %v1542_v27 = vld [vmem:[%s2242_s0 + $0x8] sm:$0xff] }
 0x23c   :  { %v1078_v21 = vsel %vm1989_vm7, %v1074_v31, 0.0  ;;  %v1079_v35 = vsel %vm1984_vm6, %v1075_v32, 0.0  ;;  %v1756_v36 = vpop.permute.xlu0 %1755  ;;  %1341 = vmatpush1.bf16.msra.mxu0 %v1815_v33  ;;  %v1829_v9 = vld [vmem:[#allocation3 + $0x4c] ss:$16 sps:$4 sm:$0xff]   ;;  %v1827_v13 = vld [vmem:[#allocation3 + $0x48] ss:$16 sps:$4 sm:$0xff]   ;;  %v1433_v32 = vcombine.high %v1542_v27, %v1542_v27 }
 0x23d   :  { %v1581_v38 = vpack.c.bf16 %v1079_v35, %v1078_v21  ;;  %v1758_v39 = vunpack.i.h.bf16 %v1756_v36  ;;  %v1757_v7 = vunpack.i.l.bf16 %v1756_v36  ;;  %v965_v56 = vsel %vm296_vm12, %v1762_v25, %v1763_v43  ;;  %v1418_v26 = vld [vmem:[%s2242_s0] sm:$0xff] }
 0x23e   :  { %v1171_v40 = vpop.permute.xlu1 %1170  ;;  %v969_v4 = vsel %vm1966_vm3, %v965_v56, 0.0  ;;  %v1420_v31 = vcombine.high %v1418_v26, %v1418_v26 }
 0x23f   :  { %1088 = vst [vmem:[#allocation3 + $0x38] sm:$0x33] %v1581_v38  ;;  %v1139_v41 = vsel %vm242_vm10, %v1733_v37, %v1757_v7  ;;  %v1140_v42 = vsel %vm242_vm10, %v1757_v7, %v1758_v39  ;;  %v1174_v47 = vrot.slane %v1171_v40, 4 }
 0x240   :  { %v1143_v11 = vsel %vm1989_vm7, %v1139_v41, 0.0  ;;  %v1144_v44 = vsel %vm1984_vm6, %v1140_v42, 0.0  ;;  %v1173_v45 = vpop.permute.xlu0 %1172  ;;  %v1818_v59 = vld [vmem:[#allocation3 + $0x8] ss:$16 sps:$4 sm:$0xff]   ;;  %v1820_v49 = vld [vmem:[#allocation3 + $0xc] ss:$16 sps:$4 sm:$0xff]  }
 0x241   :  { %v1584_v46 = vpack.c.bf16 %v1144_v44, %v1143_v11  ;;  %v1175_v48 = vrot.slane %v1173_v45, 4  ;;  %1377 = vmatprep.subr.bf16.mxu1 %v1820_v49 }
 0x242   :  { %v1771_v50 = vpop.permute.xlu1 %1770  ;;  %v1821_v51 = vld [vmem:[#allocation3 + $0x60] ss:$16 sps:$4 sm:$0xff]   ;;  %v1823_v52 = vld [vmem:[#allocation3 + $0x64] ss:$16 sps:$4 sm:$0xff]   ;;  %1378 = vmatpush1.bf16.msra.mxu1 %v1818_v59 }
 0x243   :  { %1153 = vst [vmem:[#allocation3 + $0x68] sm:$0x33] %v1584_v46  ;;  %v1176_v53 = vsel %vm127_vm0, %v1174_v47, %v1175_v48  ;;  %v1773_v54 = vunpack.i.h.bf16 %v1771_v50  ;;  %v1772_v55 = vunpack.i.l.bf16 %v1771_v50  ;;  %1342 = vmatprep.subr.bf16.mxu0 %v1823_v52 }
 0x244   :  { %v1177_v16 = vsel %vm281_vm11, %v1171_v40, %v1176_v53  ;;  %v1766_v14 = vpop.permute.xlu0 %1765  ;;  %1343 = vmatpush1.bf16.msra.mxu0 %v1821_v51 }
 0x245   :  { %1179 = vst [vmem:[#allocation3 + $0x78] sm:$0x33] %v1177_v16  ;;  %v1192_v58 = vsel %vm296_vm12, %v1772_v55, %v1773_v54  ;;  %v1768_v60 = vunpack.i.h.bf16 %v1766_v14  ;;  %v1767_v61 = vunpack.i.l.bf16 %v1766_v14 }
 0x246   :  { %v1824_v57 = vld [vmem:[#allocation3 + $0x28] ss:$16 sps:$4 sm:$0xff]   ;;  %v1826_v62 = vld [vmem:[#allocation3 + $0x2c] ss:$16 sps:$4 sm:$0xff]   ;;  %v1196_v5 = vsel %vm1971_vm4, %v1192_v58, 0.0 }
 0x247   :  { %v1191_v1 = vsel %vm296_vm12, %v1768_v60, %v1772_v55  ;;  %v966_v3 = vsel %vm296_vm12, %v1763_v43, %v1767_v61  ;;  %1379 = vmatprep.subr.bf16.mxu1 %v1826_v62 }
 0x248   :  { %v1195_v6 = vsel %vm1966_vm3, %v1191_v1, 0.0  ;;  %v970_v8 = vsel %vm1971_vm4, %v966_v3, 0.0  ;;  %1380 = vmatpush1.bf16.msra.mxu1 %v1824_v57 }
 0x249   :  { %v1587_v10 = vpack.c.bf16 %v1196_v5, %v1195_v6  ;;  %v1576_v12 = vpack.c.bf16 %v970_v8, %v969_v4  ;;  %1381 = vmatprep.subr.bf16.mxu1 %v1829_v9 }
 0x24b   :  { %1205 = vst [vmem:[#allocation3 + $0x88] sm:$0x33] %v1587_v10  ;;  %979 = vst [vmem:[#allocation3 + $0x80] sm:$0x33] %v1576_v12 }
 0x24c   :  { %v1832_v15 = vld [vmem:[#allocation3 + $0x6c] ss:$16 sps:$4 sm:$0xff]   ;;  %1382 = vmatpush1.bf16.msra.mxu1 %v1827_v13  ;;  %v1830_v17 = vld [vmem:[#allocation3 + $0x68] ss:$16 sps:$4 sm:$0xff]  }
 0x24d   :  { %1383 = vmatprep.subr.bf16.mxu1 %v1832_v15 }
 0x250   :  { %1384 = vmatpush1.bf16.msra.mxu1 %v1830_v17 }
 0x252   :  { %v1223_v18 = vld [vmem:[#allocation3 + $0x80] sm:$0xff]  ;;  %v1224_v0 = vld [vmem:[#allocation3 + $0x88] sm:$0xff] }
 0x253   :  { %v1535_v63 = vcombine.high %v1223_v18, %v1223_v18  ;;  %v1537_v19 = vcombine.high %v1224_v0, %v1224_v0  ;;  %v1534_v2 = vcombine.low %v1223_v18, %v1223_v18  ;;  %v1536_v20 = vcombine.low %v1224_v0, %v1224_v0 }
 0x255   :  { %1538 = vmatprep.subr.msk.bf16.mxu0 %vm127_vm0, %v1535_v63  ;;  %1540 = vmatprep.subr.msk.bf16.mxu1 %vm127_vm0, %v1537_v19  ;;  %v1325_v22 = vsel %vm127_vm0, %v1534_v2, 0  ;;  %v1331_v23 = vsel %vm127_vm0, %v1536_v20, 0  ;;  %v1229_v28 = vpop.permute.xlu0 %1228 }
 0x256   :  { %1345 = vmatpush1.bf16.msra.mxu0 %v1325_v22  ;;  %1386 = vmatpush1.bf16.msra.mxu1 %v1331_v23 }
 0x259   :  { %1539 = vmatmul.mubr.msk.bf16.vlgmr.msra.gmra.mrb[4].mxu0 %vm651_vm13, %v1206_v24  ;;  %1541 = vmatmul.mubr.msk.bf16.vlgmr.msra.gmra.mrb[4].mxu1 %vm651_vm13, %v1206_v24 }
 0x32c   :  { %v1370_v29 = vpop.f32.mrb[4].mxu0  ;;  %v1411_v30 = vpop.f32.mrb[4].mxu1 }
 0x32d   :  { %v1371_v33 = vadd.f32 %v1370_v29, %v1229_v28  ;;  %v1412_v34 = vadd.f32 %v1411_v30, %v1229_v28  ;;  %v1372_v21 = vpop.f32.mrb[5].mxu0  ;;  %v1413_v35 = vpop.f32.mrb[5].mxu1 }
 0x32e   :  { %v1373_v36 = vadd.f32 %v1372_v21, %v1229_v28  ;;  %v1414_v37 = vadd.f32 %v1413_v35, %v1229_v28  ;;  %v1374_v38 = vpop.f32.mrb[6].mxu0  ;;  %v1415_v39 = vpop.f32.mrb[6].mxu1 }
 0x32f   :  { %v1422_v7 = vadd.f32 %v1418_v26, %v1371_v33  ;;  %v1435_v40 = vadd.f32 %v1542_v27, %v1412_v34  ;;  %v1375_v41 = vpop.f32.mrb[7].mxu0  ;;  %v1416_v42 = vpop.f32.mrb[7].mxu1 }
 0x330   :  { %v1423_v43 = vadd.f32 %v1420_v31, %v1373_v36  ;;  %v1436_v11 = vadd.f32 %v1433_v32, %v1414_v37 }
 0x331   :  { %v1424_v44 = vmax.f32 %v1422_v7, 0.0  ;;  %v1437_v45 = vmax.f32 %v1435_v40, 0.0 }
 0x332   :  { %v1425_v59 = vmax.f32 %v1423_v43, 0.0  ;;  %v1438_v25 = vmax.f32 %v1436_v11, 0.0 }
 0x334   :  { %v1428_v46 = vcombine.low %v1424_v44, %v1425_v59  ;;  %v1441_v47 = vcombine.low %v1437_v45, %v1438_v25 }
 0x336   :  { %1430 = vst [vmem:[%s2247_s5] sm:$0xff] %v1428_v46  ;;  %1543 = vst [vmem:[%s2247_s5 + $0x8] sm:$0xff] %v1441_v47 }

</bundles_post_ra>
